<compile_context>
chip_gen: v7x
topology: tpu7x:2x2x1
jax: 0.10.0
libtpu: 0.0.40
codegen_flags: <defaults>
</compile_context>

<pallas_src>
import jax
import jax.numpy as jnp
from jax.experimental import pallas as pl
from jax.experimental.pallas import tpu as pltpu


def _round_up(x: int, m: int) -> int:
    return ((x + m - 1) // m) * m


def _softplus(z):
    # Numerically stable softplus: max(z, 0) + log1p(exp(-|z|))
    return jnp.maximum(z, 0.0) + jnp.log1p(jnp.exp(-jnp.abs(z)))


def _usable_vmem_bytes() -> int:
    """~80% of physical VMEM (128 MiB v5e/v6e, 64 MiB v7x), leaving Mosaic headroom."""
    try:
        phys = int(pltpu.get_tpu_info().vmem_capacity_bytes)
    except Exception:
        phys = 64 * 1024 * 1024
    return int(phys * 0.8)


def _make_encode_z_kernel(n_hidden: int, transform, compute_dtype):
    """Fused kernel: transform -> (streamed) layer-0 matmul accumulate ->
    softplus hidden stack -> fused [loc | sig | pad] head, written lane-dense."""

    def kernel(*refs):
        # refs = (x_ref,
        #         w_0, b_0, ..., w_{n-1}, b_{n-1},   hidden layers (W: bf16, b: f32)
        #         w_head, b_head,                    fused [loc | sig | 0-pad] head
        #         out_ref,                           (tb, head_pad) lane-dense output
        #         acc_ref, rsum_ref)                 f32 scratch accumulators
        x_ref = refs[0]
        param_refs = refs[1 : 1 + 2 * n_hidden + 2]
        out_ref = refs[1 + 2 * n_hidden + 2]
        acc_ref = refs[-2]
        rsum_ref = refs[-1]

        k = pl.program_id(1)
        nk = pl.num_programs(1)

        @pl.when(k == 0)
        def _init():
            acc_ref[...] = jnp.zeros_like(acc_ref)
            if transform == "normalize":
                rsum_ref[...] = jnp.zeros_like(rsum_ref)

        x = x_ref[...].astype(jnp.float32)

        # transform_input (matches the PyTorch helper); per-chunk application.
        if transform is None:
            pass
        elif transform == "log":
            x = jnp.log1p(x)
        elif transform == "normalize":
            # Accumulate the row sum across gene chunks; scaling commutes with the
            # matmul, so the exact divide happens once at finalize.
            rsum_ref[...] += jnp.sum(x, axis=-1, keepdims=True)
        else:
            raise NotImplementedError(
                "Specified an input transform that is not supported."
            )

        # Layer-0 matmul: bf16 MXU inputs, f32 accumulation into VMEM scratch.
        acc_ref[...] += jnp.dot(
            x.astype(compute_dtype),
            param_refs[0][...],
            preferred_element_type=jnp.float32,
        )

        @pl.when(k == nk - 1)
        def _finalize():
            z = acc_ref[...]
            if transform == "normalize":
                z = z / rsum_ref[...]  # exact divide (pre-matmul normalization)
            z = z + param_refs[1][...]
            h = _softplus(z)

            # Remaining hidden layers.
            for layer in range(1, n_hidden):
                w_ref = param_refs[2 * layer]
                b_ref = param_refs[2 * layer + 1]
                zz = (
                    jnp.dot(
                        h.astype(compute_dtype),
                        w_ref[...],
                        preferred_element_type=jnp.float32,
                    )
                    + b_ref[...]
                )
                h = _softplus(zz)

            # Fused [loc | sig | 0-pad] head; exp() on sig happens in the wrapper.
            head = (
                jnp.dot(
                    h.astype(compute_dtype),
                    param_refs[2 * n_hidden][...],
                    preferred_element_type=jnp.float32,
                )
                + param_refs[2 * n_hidden + 1][...]
            )
            out_ref[...] = head.astype(out_ref.dtype)

    return kernel


def init_encode_z_params(key, input_dim, hidden_dims, output_dim):
    """Deterministic PyTorch-style (uniform +/- 1/sqrt(fan_in)) init.

    Weights stored as (in_features, out_features); biases as (1, out_features)."""
    params = {"hidden": []}
    dims = [input_dim] + list(hidden_dims)
    for i in range(len(hidden_dims)):
        key, kw, kb = jax.random.split(key, 3)
        bound = 1.0 / float(jnp.sqrt(dims[i]))
        w = jax.random.uniform(kw, (dims[i], dims[i + 1]), jnp.float32, -bound, bound)
        b = jax.random.uniform(kb, (1, dims[i + 1]), jnp.float32, -bound, bound)
        params["hidden"].append((w, b))
    bound = 1.0 / float(jnp.sqrt(hidden_dims[-1]))
    key, k1, k2, k3, k4 = jax.random.split(key, 5)
    params["loc"] = (
        jax.random.uniform(k1, (hidden_dims[-1], output_dim), jnp.float32, -bound, bound),
        jax.random.uniform(k2, (1, output_dim), jnp.float32, -bound, bound),
    )
    params["sig"] = (
        jax.random.uniform(k3, (hidden_dims[-1], output_dim), jnp.float32, -bound, bound),
        jax.random.uniform(k4, (1, output_dim), jnp.float32, -bound, bound),
    )
    return params


def encode_z_forward(
    x,
    params,
    *,
    input_dim,
    output_dim,
    transform="log",
    tb=256,
    tk=None,
    compute_dtype=jnp.bfloat16,
    x_dtype=jnp.float32,
):
    """Pallas forward pass.  Returns {'loc': ..., 'scale': ...} like the module."""
    if transform not in (None, "log", "normalize"):
        raise NotImplementedError(
            "Specified an input transform that is not supported."
        )

    # x.reshape(-1, input_dim) (glue, stays in JAX).  x_dtype=bf16 halves the
    # streaming x DMA at realistic gene counts; kernel upcasts to f32 internally.
    x = x.reshape(-1, input_dim).astype(x_dtype)
    B = x.shape[0]

    # Batch tile: multiple of 128, no larger than the padded batch.
    tb = max(128, _round_up(min(tb, _round_up(max(B, 1), 128)), 128))
    B_pad = _round_up(max(B, 1), tb)

    hidden_params = params["hidden"]
    n_hidden = len(hidden_params)
    hidden_dims = [w.shape[1] for (w, _) in hidden_params]
    dims_pad = [_round_up(d, 128) for d in hidden_dims]  # lane-dense hidden widths

    vmem_cap = _usable_vmem_bytes()

    # Gene (K) axis chunking: keep the full gene axis resident when the first-layer
    # weight fits comfortably (v5e/v6e preferred path); otherwise stream ~2048-gene
    # chunks (v7x / very large gene counts).
    K_base = _round_up(input_dim, 128)
    w0_item = jnp.dtype(compute_dtype).itemsize
    if tk is None:
        w0_full_bytes = K_base * dims_pad[0] * w0_item
        tk = K_base if w0_full_bytes <= vmem_cap // 3 else 2048
    tk = _round_up(min(tk, K_base), 128)
    K_pad = _round_up(input_dim, tk)
    num_k = K_pad // tk

    # Pad x (rows are independent; pad gene columns are zero -> inert for all transforms).
    if (B_pad, K_pad) != x.shape:
        x = jnp.pad(x, ((0, B_pad - B), (0, K_pad - input_dim)))

    # Flatten / pad parameters in kernel order: weights bf16 (MXU inputs), biases f32.
    f32 = jnp.float32
    in_dims_pad = [K_pad] + dims_pad[:-1]
    flat_params = []
    for l, (w, b) in enumerate(hidden_params):
        in_d, out_d = w.shape
        wp = jnp.zeros((in_dims_pad[l], dims_pad[l]), compute_dtype)
        wp = wp.at[:in_d, :out_d].set(w.astype(compute_dtype))
        bp = jnp.zeros((1, dims_pad[l]), f32)
        bp = bp.at[:, :out_d].set(b.reshape(1, -1).astype(f32))
        flat_params += [wp, bp]

    # Fused, lane-padded [loc | sig] head: one matmul, lane-dense 128-wide output.
    w_loc, b_loc = params["loc"]
    w_sig, b_sig = params["sig"]
    h_last = w_loc.shape[0]
    head_pad = _round_up(2 * output_dim, 128)
    w_head = jnp.zeros((dims_pad[-1], head_pad), compute_dtype)
    w_head = w_head.at[:h_last, :output_dim].set(w_loc.astype(compute_dtype))
    w_head = w_head.at[:h_last, output_dim : 2 * output_dim].set(w_sig.astype(compute_dtype))
    b_head = jnp.zeros((1, head_pad), f32)
    b_head = b_head.at[:, :output_dim].set(b_loc.reshape(1, -1).astype(f32))
    b_head = b_head.at[:, output_dim : 2 * output_dim].set(b_sig.reshape(1, -1).astype(f32))
    flat_params += [w_head, b_head]

    # BlockSpecs.
    in_specs = [pl.BlockSpec((tb, tk), lambda i, k: (i, k))]
    if num_k == 1:
        # Fully resident first-layer weight: single buffer (no pointless 2x copy).
        in_specs.append(
            pl.BlockSpec((tk, dims_pad[0]), lambda i, k: (k, 0),
                         pipeline_mode=pl.Buffered(1))
        )
    else:
        # Streamed over gene chunks: keep default double-buffering for DMA overlap.
        # TODO(synk): sweep pl.Buffered(3) here on v7x at production shapes.
        in_specs.append(pl.BlockSpec((tk, dims_pad[0]), lambda i, k: (k, 0)))
    for p in flat_params[1:]:
        # Replicated parameters: constant index map + single buffer.
        in_specs.append(
            pl.BlockSpec(p.shape, lambda i, k: (0, 0), pipeline_mode=pl.Buffered(1))
        )

    out_specs = pl.BlockSpec((tb, head_pad), lambda i, k: (i, 0))
    out_shape = jax.ShapeDtypeStruct((B_pad, head_pad), f32)

    nb = B_pad // tb
    x_item = jnp.dtype(x_dtype).itemsize
    w0_bytes = int(flat_params[0].size) * flat_params[0].dtype.itemsize
    rest_bytes = sum(int(p.size) * p.dtype.itemsize for p in flat_params[1:])

    # Cost estimate for XLA scheduling around the custom call.
    layer_dims = [K_pad] + dims_pad
    flops = 2 * B_pad * (
        sum(a * b for a, b in zip(layer_dims[:-1], layer_dims[1:]))
        + dims_pad[-1] * head_pad
    )
    transcendentals = B_pad * (
        (K_pad if transform == "log" else 0) + 2 * sum(dims_pad)
    )
    bytes_accessed = (
        B_pad * K_pad * x_item
        + (nb if num_k > 1 else 1) * w0_bytes  # w0 re-streamed per batch tile if chunked
        + rest_bytes
        + B_pad * head_pad * 4
    )

    # Explicit VMEM budget: single-buffered resident params, (1-2)x w0 chunk,
    # double-buffered x/out tiles, scratch, slack; capped generation-aware.
    vmem_estimate = (
        rest_bytes
        + (1 if num_k == 1 else 2) * tk * dims_pad[0] * w0_item
        + 2 * tb * tk * x_item
        + 2 * tb * head_pad * 4
        + tb * dims_pad[0] * 4
        + tb * 128 * 4
        + (2 << 20)
    )
    vmem_limit = int(min(vmem_cap, max(32 * 1024 * 1024, vmem_estimate)))

    kernel = _make_encode_z_kernel(n_hidden, transform, compute_dtype)

    fused = pl.pallas_call(
        kernel,
        out_shape=out_shape,
        grid=(nb, num_k),
        in_specs=in_specs,
        out_specs=out_specs,
        scratch_shapes=[
            pltpu.VMEM((tb, dims_pad[0]), jnp.float32),  # layer-0 pre-activation acc
            pltpu.VMEM((tb, 1), jnp.float32),            # row-sum acc (normalize)
        ],
        compiler_params=pltpu.CompilerParams(
            dimension_semantics=("parallel", "arbitrary"),
            vmem_limit_bytes=vmem_limit,
        ),
        cost_estimate=pl.CostEstimate(
            flops=int(flops),
            transcendentals=int(transcendentals),
            bytes_accessed=int(bytes_accessed),
        ),
    )(x, *flat_params)

    loc = fused[:B, :output_dim]
    # exp() only on the narrow (B, output_dim) scale slice, fused by XLA outside
    # the kernel (removes per-step iota/select/full-width exp from the kernel).
    scale = jnp.exp(fused[:B, output_dim : 2 * output_dim])
    # .squeeze() as in the PyTorch module
    return {"loc": jnp.squeeze(loc), "scale": jnp.squeeze(scale)}


def _reference_forward(x, params, *, input_dim, transform="log", compute_dtype=jnp.float32):
    """Pure-JAX reference (same bf16-input / f32-accumulate convention when asked)."""
    x = x.reshape(-1, input_dim).astype(jnp.float32)
    if transform == "log":
        x = jnp.log1p(x)
    elif transform == "normalize":
        x = x / jnp.sum(x, axis=-1, keepdims=True)
    h = x
    for w, b in params["hidden"]:
        z = (
            jnp.dot(h.astype(compute_dtype), w.astype(compute_dtype),
                    preferred_element_type=jnp.float32)
            + b.reshape(1, -1)
        )
        h = jax.nn.softplus(z)
    loc = (
        jnp.dot(h.astype(compute_dtype), params["loc"][0].astype(compute_dtype),
                preferred_element_type=jnp.float32)
        + params["loc"][1].reshape(1, -1)
    )
    sig = (
        jnp.dot(h.astype(compute_dtype), params["sig"][0].astype(compute_dtype),
                preferred_element_type=jnp.float32)
        + params["sig"][1].reshape(1, -1)
    )
    return {"loc": jnp.squeeze(loc), "scale": jnp.squeeze(jnp.exp(sig))}


if __name__ == "__main__":
    key = jax.random.PRNGKey(0)

    # ---------------- Test 1: demo shapes, 'log' transform, resident-weight path.
    # input_dim=128 "genes", hidden_dims=[64, 32] (padded to 128), latent dim 8.
    # batch=200 is NOT a multiple of the 128-row tile -> exercises pad/slice;
    # grid = (2, 1) so both v7x TensorCores get a batch tile.
    input_dim, hidden_dims, output_dim, batch = 128, [64, 32], 8, 200
    key, kx, kp = jax.random.split(key, 3)
    x = jax.random.uniform(kx, (batch, input_dim), jnp.float32, 0.0, 10.0)
    params = init_encode_z_params(kp, input_dim, hidden_dims, output_dim)

    out = encode_z_forward(
        x, params, input_dim=input_dim, output_dim=output_dim,
        transform="log", tb=128,
    )
    jax.block_until_ready(out)

    ref_bf16 = _reference_forward(
        x, params, input_dim=input_dim, transform="log", compute_dtype=jnp.bfloat16)
    ref_f32 = _reference_forward(
        x, params, input_dim=input_dim, transform="log", compute_dtype=jnp.float32)

    assert out["loc"].shape == (batch, output_dim)
    assert out["scale"].shape == (batch, output_dim)
    assert jnp.allclose(out["loc"], ref_bf16["loc"], atol=1e-3, rtol=1e-3)
    assert jnp.allclose(out["scale"], ref_bf16["scale"], atol=1e-3, rtol=1e-3)
    assert jnp.allclose(out["loc"], ref_f32["loc"], atol=0.25, rtol=0.25)
    assert jnp.allclose(out["scale"], ref_f32["scale"], atol=0.25, rtol=0.25)

    # ---------------- Test 2: gene-axis streaming (num_k=2) + 'normalize' transform.
    # Exercises the accumulator init/finalize path and the streamed row-sum.
    input_dim2, batch2 = 256, 96
    key, kx2, kp2 = jax.random.split(key, 3)
    x2 = jax.random.uniform(kx2, (batch2, input_dim2), jnp.float32, 0.1, 10.0)
    params2 = init_encode_z_params(kp2, input_dim2, hidden_dims, output_dim)

    out2 = encode_z_forward(
        x2, params2, input_dim=input_dim2, output_dim=output_dim,
        transform="normalize", tb=128, tk=128,
    )
    jax.block_until_ready(out2)

    ref2_bf16 = _reference_forward(
        x2, params2, input_dim=input_dim2, transform="normalize",
        compute_dtype=jnp.bfloat16)
    ref2_f32 = _reference_forward(
        x2, params2, input_dim=input_dim2, transform="normalize",
        compute_dtype=jnp.float32)

    assert out2["loc"].shape == (batch2, output_dim)
    assert out2["scale"].shape == (batch2, output_dim)
    assert jnp.allclose(out2["loc"], ref2_bf16["loc"], atol=2e-2, rtol=2e-2)
    assert jnp.allclose(out2["scale"], ref2_bf16["scale"], atol=2e-2, rtol=2e-2)
    assert jnp.allclose(out2["loc"], ref2_f32["loc"], atol=0.1, rtol=0.1)
    assert jnp.allclose(out2["scale"], ref2_f32["scale"], atol=0.1, rtol=0.1)

    print("KERNEL_OK")
</pallas_src>

<mosaic_0001>
module attributes {stable_mosaic.version = 11 : i64} {
  func.func @kernel(%arg0: i32, %arg1: i32, %arg2: memref<128x128xf32, #tpu.memory_space<vmem>>, %arg3: memref<128x128xbf16, #tpu.memory_space<vmem>>, %arg4: memref<1x128xf32, #tpu.memory_space<vmem>>, %arg5: memref<128x128xbf16, #tpu.memory_space<vmem>>, %arg6: memref<1x128xf32, #tpu.memory_space<vmem>>, %arg7: memref<128x128xbf16, #tpu.memory_space<vmem>>, %arg8: memref<1x128xf32, #tpu.memory_space<vmem>>, %arg9: memref<128x128xf32, #tpu.memory_space<vmem>>, %arg10: memref<128x128xf32, #tpu.memory_space<vmem>>, %arg11: memref<128x1xf32, #tpu.memory_space<vmem>>) attributes {dimension_semantics = [#tpu.dimension_semantics<parallel>, #tpu.dimension_semantics<arbitrary>], iteration_bounds = array<i64: 2, 1>, scalar_prefetch = 0 : i64, scratch_operands = 2 : i64, tpu.core_type = #tpu.core_type<tc>, window_params = [{transform_indices = @transform_0, window_bounds = array<i64: 128, 128>}, {pipeline_mode = #tpu.pipeline_mode<synchronous>, transform_indices = @transform_1, window_bounds = array<i64: 128, 128>}, {pipeline_mode = #tpu.pipeline_mode<synchronous>, transform_indices = @transform_2, window_bounds = array<i64: 1, 128>}, {pipeline_mode = #tpu.pipeline_mode<synchronous>, transform_indices = @transform_3, window_bounds = array<i64: 128, 128>}, {pipeline_mode = #tpu.pipeline_mode<synchronous>, transform_indices = @transform_4, window_bounds = array<i64: 1, 128>}, {pipeline_mode = #tpu.pipeline_mode<synchronous>, transform_indices = @transform_5, window_bounds = array<i64: 128, 128>}, {pipeline_mode = #tpu.pipeline_mode<synchronous>, transform_indices = @transform_6, window_bounds = array<i64: 1, 128>}, {transform_indices = @transform_7, window_bounds = array<i64: 128, 128>}]} {
    %c0_i32 = arith.constant 0 : i32
    %0 = arith.cmpi eq, %arg1, %c0_i32 : i32
    %1 = arith.extui %0 : i1 to i32
    %c0_i32_0 = arith.constant 0 : i32
    %2 = arith.cmpi ne, %1, %c0_i32_0 : i32
    scf.if %2 {
      %cst_10 = arith.constant 0.000000e+00 : f32
      %14 = vector.broadcast %cst_10 : f32 to vector<128x128xf32>
      %c0_11 = arith.constant 0 : index
      %c0_12 = arith.constant 0 : index
      %15 = vector.load %arg10[%c0_11, %c0_12] : memref<128x128xf32, #tpu.memory_space<vmem>>, vector<128x128xf32>
      tpu.vector_store %arg10[%c0_11, %c0_12], %14 {strides = array<i32>} : memref<128x128xf32, #tpu.memory_space<vmem>>, vector<128x128xf32>,
    } else {
    }
    %c0 = arith.constant 0 : index
    %c0_1 = arith.constant 0 : index
    %3 = vector.load %arg2[%c0, %c0_1] : memref<128x128xf32, #tpu.memory_space<vmem>>, vector<128x128xf32>
    %4 = math.log1p %3 : vector<128x128xf32>
    %c0_2 = arith.constant 0 : index
    %c0_3 = arith.constant 0 : index
    %5 = vector.load %arg10[%c0_2, %c0_3] : memref<128x128xf32, #tpu.memory_space<vmem>>, vector<128x128xf32>
    %6 = arith.truncf %4 : vector<128x128xf32> to vector<128x128xbf16>
    %c0_4 = arith.constant 0 : index
    %c0_5 = arith.constant 0 : index
    %7 = vector.load %arg3[%c0_4, %c0_5] : memref<128x128xbf16, #tpu.memory_space<vmem>>, vector<128x128xbf16>
    %cst = arith.constant dense<0.000000e+00> : vector<128x128xf32>
    %8 = tpu.matmul %6, %7, %cst {dimension_numbers = #tpu.dot_dimension_numbers<[1], [0], [0], [1], [0, 0, 1, 1], [], []>} : vector<128x128xbf16>, vector<128x128xbf16>, vector<128x128xf32> -> vector<128x128xf32>
    %9 = arith.addf %5, %8 : vector<128x128xf32>
    %c0_6 = arith.constant 0 : index
    %c0_7 = arith.constant 0 : index
    %10 = vector.load %arg10[%c0_6, %c0_7] : memref<128x128xf32, #tpu.memory_space<vmem>>, vector<128x128xf32>
    tpu.vector_store %arg10[%c0_6, %c0_7], %9 {strides = array<i32>} : memref<128x128xf32, #tpu.memory_space<vmem>>, vector<128x128xf32>,
    %c0_i32_8 = arith.constant 0 : i32
    %11 = arith.cmpi eq, %arg1, %c0_i32_8 : i32
    %12 = arith.extui %11 : i1 to i32
    %c0_i32_9 = arith.constant 0 : i32
    %13 = arith.cmpi ne, %12, %c0_i32_9 : i32
    scf.if %13 {
      %c0_10 = arith.constant 0 : index
      %c0_11 = arith.constant 0 : index
      %14 = vector.load %arg10[%c0_10, %c0_11] : memref<128x128xf32, #tpu.memory_space<vmem>>, vector<128x128xf32>
      %c0_12 = arith.constant 0 : index
      %c0_13 = arith.constant 0 : index
      %15 = vector.load %arg4[%c0_12, %c0_13] : memref<1x128xf32, #tpu.memory_space<vmem>>, vector<1x128xf32>
      %16 = vector.broadcast %15 : vector<1x128xf32> to vector<128x128xf32>
      %17 = arith.addf %14, %16 : vector<128x128xf32>
      %cst_14 = arith.constant 0.000000e+00 : f32
      %18 = vector.broadcast %cst_14 : f32 to vector<128x128xf32>
      %19 = arith.maximumf %17, %18 : vector<128x128xf32>
      %20 = math.absf %17 : vector<128x128xf32>
      %cst_15 = arith.constant 0.000000e+00 : f32
      %21 = vector.broadcast %cst_15 : f32 to vector<128x128xf32>
      %22 = arith.subf %21, %20 : vector<128x128xf32>
      %23 = math.exp %22 : vector<128x128xf32>
      %24 = math.log1p %23 : vector<128x128xf32>
      %25 = arith.addf %19, %24 : vector<128x128xf32>
      %26 = arith.truncf %25 : vector<128x128xf32> to vector<128x128xbf16>
      %c0_16 = arith.constant 0 : index
      %c0_17 = arith.constant 0 : index
      %27 = vector.load %arg5[%c0_16, %c0_17] : memref<128x128xbf16, #tpu.memory_space<vmem>>, vector<128x128xbf16>
      %cst_18 = arith.constant dense<0.000000e+00> : vector<128x128xf32>
      %28 = tpu.matmul %26, %27, %cst_18 {dimension_numbers = #tpu.dot_dimension_numbers<[1], [0], [0], [1], [0, 0, 1, 1], [], []>} : vector<128x128xbf16>, vector<128x128xbf16>, vector<128x128xf32> -> vector<128x128xf32>
      %c0_19 = arith.constant 0 : index
      %c0_20 = arith.constant 0 : index
      %29 = vector.load %arg6[%c0_19, %c0_20] : memref<1x128xf32, #tpu.memory_space<vmem>>, vector<1x128xf32>
      %30 = vector.broadcast %29 : vector<1x128xf32> to vector<128x128xf32>
      %31 = arith.addf %28, %30 : vector<128x128xf32>
      %cst_21 = arith.constant 0.000000e+00 : f32
      %32 = vector.broadcast %cst_21 : f32 to vector<128x128xf32>
      %33 = arith.maximumf %31, %32 : vector<128x128xf32>
      %34 = math.absf %31 : vector<128x128xf32>
      %cst_22 = arith.constant 0.000000e+00 : f32
      %35 = vector.broadcast %cst_22 : f32 to vector<128x128xf32>
      %36 = arith.subf %35, %34 : vector<128x128xf32>
      %37 = math.exp %36 : vector<128x128xf32>
      %38 = math.log1p %37 : vector<128x128xf32>
      %39 = arith.addf %33, %38 : vector<128x128xf32>
      %40 = arith.truncf %39 : vector<128x128xf32> to vector<128x128xbf16>
      %c0_23 = arith.constant 0 : index
      %c0_24 = arith.constant 0 : index
      %41 = vector.load %arg7[%c0_23, %c0_24] : memref<128x128xbf16, #tpu.memory_space<vmem>>, vector<128x128xbf16>
      %cst_25 = arith.constant dense<0.000000e+00> : vector<128x128xf32>
      %42 = tpu.matmul %40, %41, %cst_25 {dimension_numbers = #tpu.dot_dimension_numbers<[1], [0], [0], [1], [0, 0, 1, 1], [], []>} : vector<128x128xbf16>, vector<128x128xbf16>, vector<128x128xf32> -> vector<128x128xf32>
      %c0_26 = arith.constant 0 : index
      %c0_27 = arith.constant 0 : index
      %43 = vector.load %arg8[%c0_26, %c0_27] : memref<1x128xf32, #tpu.memory_space<vmem>>, vector<1x128xf32>
      %44 = vector.broadcast %43 : vector<1x128xf32> to vector<128x128xf32>
      %45 = arith.addf %42, %44 : vector<128x128xf32>
      %c0_28 = arith.constant 0 : index
      %c0_29 = arith.constant 0 : index
      %46 = vector.load %arg9[%c0_28, %c0_29] : memref<128x128xf32, #tpu.memory_space<vmem>>, vector<128x128xf32>
      tpu.vector_store %arg9[%c0_28, %c0_29], %45 {strides = array<i32>} : memref<128x128xf32, #tpu.memory_space<vmem>>, vector<128x128xf32>,
    } else {
    }
    return
  }
  func.func @transform_0(%arg0: i32, %arg1: i32) -> (i32, i32) {
    %c0_i32 = arith.constant 0 : i32
    return %arg0, %arg1 : i32, i32
  }
  func.func @transform_1(%arg0: i32, %arg1: i32) -> (i32, i32) {
    %c0_i32 = arith.constant 0 : i32
    %c0_i32_0 = arith.constant 0 : i32
    return %arg1, %c0_i32 : i32, i32
  }
  func.func @transform_2(%arg0: i32, %arg1: i32) -> (i32, i32) {
    %c0_i32 = arith.constant 0 : i32
    %c0_i32_0 = arith.constant 0 : i32
    %c0_i32_1 = arith.constant 0 : i32
    return %c0_i32, %c0_i32_0 : i32, i32
  }
  func.func @transform_3(%arg0: i32, %arg1: i32) -> (i32, i32) {
    %c0_i32 = arith.constant 0 : i32
    %c0_i32_0 = arith.constant 0 : i32
    %c0_i32_1 = arith.constant 0 : i32
    return %c0_i32, %c0_i32_0 : i32, i32
  }
  func.func @transform_4(%arg0: i32, %arg1: i32) -> (i32, i32) {
    %c0_i32 = arith.constant 0 : i32
    %c0_i32_0 = arith.constant 0 : i32
    %c0_i32_1 = arith.constant 0 : i32
    return %c0_i32, %c0_i32_0 : i32, i32
  }
  func.func @transform_5(%arg0: i32, %arg1: i32) -> (i32, i32) {
    %c0_i32 = arith.constant 0 : i32
    %c0_i32_0 = arith.constant 0 : i32
    %c0_i32_1 = arith.constant 0 : i32
    return %c0_i32, %c0_i32_0 : i32, i32
  }
  func.func @transform_6(%arg0: i32, %arg1: i32) -> (i32, i32) {
    %c0_i32 = arith.constant 0 : i32
    %c0_i32_0 = arith.constant 0 : i32
    %c0_i32_1 = arith.constant 0 : i32
    return %c0_i32, %c0_i32_0 : i32, i32
  }
  func.func @transform_7(%arg0: i32, %arg1: i32) -> (i32, i32) {
    %c0_i32 = arith.constant 0 : i32
    %c0_i32_0 = arith.constant 0 : i32
    return %arg0, %c0_i32 : i32, i32
  }
}

</mosaic_0001>

<bundles_post_ra>
// kernel: tpu_custom_call.1
= control target key start
LH: loop header
LB: loop body
LE: loop exit
PB: predicated region body
PF: predicated region fallthrough
CT: control target
= control target key end

     0   :  { %s3562_s0 = inlined_call_operand.hbm [shape: f32[256,128], index: 0, kind: input, shape index: {}]   ;;  %s3563_s1 = inlined_call_operand.hbm [shape: bf16[128,128], index: 1, kind: input, shape index: {}]   ;;  %s3564_s2 = inlined_call_operand.vmem [shape: f32[1,128], index: 2, kind: input, shape index: {}]   ;;  %s3565_s3 = inlined_call_operand.hbm [shape: bf16[128,128], index: 3, kind: input, shape index: {}]   ;;  %s3566_s4 = inlined_call_operand.vmem [shape: f32[1,128], index: 4, kind: input, shape index: {}]   ;;  %s3567_s5 = inlined_call_operand.hbm [shape: bf16[128,128], index: 5, kind: input, shape index: {}]   ;;  %s3568_s6 = inlined_call_operand.vmem [shape: f32[1,128], index: 6, kind: input, shape index: {}]   ;;  %s3569_s7 = inlined_call_operand.hbm [shape: f32[256,128], index: 7, kind: output, shape index: {}]  }
   0x1   :  { %3577 = sst [smem:[#allocation20_spill]] %s3569_s7 }
   0x2   :  { %12 = vsyncpa [#allocation5], 0 }
   0x3   :  { %14 = vsyncpa [#allocation5 + $0x1], 0 }
   0x4   :  { %15 = vsyncpa [#allocation8], 0 }
   0x5   :  { %16 = vsyncpa [#allocation11], 0 }
   0x6   :  { %17 = vsyncpa [#allocation6], 0 }
   0x7   :  { %19 = vsyncpa [#allocation6 + $0x1], 0  ;;  %s2533_s24 = smov 0   ;;  %s2535_s25 = smov 0  }
   0x8   :  { %s2537_s26 = smov 0   ;;  %s2539_s27 = smov 0  }
   0x9   :  { %s2541_s28 = smov 0   ;;  %s2543_s29 = smov 0  }
   0xa LB: > { %3578 = sst [smem:[#allocation17_spill]] %s2460_s24  ;;  %s1783_s30 = sadd.s32 4294967295, %s2480_s29   ;;  %s2480_s29 = sphi %s2543_s29, %s25_s29   ;;  %s2476_s28 = sphi %s2541_s28, %s3672_s28   ;;  %s2472_s27 = sphi %s2539_s27, %s3671_s27   ;;  %s2468_s26 = sphi %s2537_s26, %s3670_s26   ;;  %s2464_s25 = sphi %s2535_s25, %s3669_s25   ;;  %s2460_s24 = sphi %s2533_s24, %s3668_s24  }
   0xb   : > { %3579 = sst [smem:[#allocation18_spill]] %s2472_s27  ;;  %s1784_s8 = sadd.s32 4294967294, %s2480_s29  }
   0xc   : > { %p59_p0 = scmp.ne.s32.totalorder %s2464_s25, %s2460_s24  ;;  %p2567_p1 = scmp.eq.s32.totalorder %s1783_s30, 0 }
   0xd   : > { %p2571_p2 = scmp.eq.s32.totalorder %s1783_s30, 1  ;;  %p220_p3 = scmp.eq.s32.totalorder %s1784_s8, 1 }
   0xe   : > { %s3580_s9 = scalar_select %p2567_p1, 1, 0 }
   0xf   : > { %s3581_s10 = scalar_select %p2571_p2, 1, 0 }
  0x10   : > { %p2577_p4 = por %p2567_p1, %p59_p0  ;;  %p1785_p5 = scmp.ge.s32.totalorder %s2480_s29, 1 }
  0x11   : > { %p2582_p6 = por %p220_p3, %p59_p0  ;;  %p227_p7 = scmp.lt.s32.totalorder %s2480_s29, 3 }
  0x12   : > { %s3582_s11 = scalar_select %p2577_p4, 1, 0 }
  0x13   : > { %s3583_s12 = scalar_select %p2582_p6, 1, 0 }
  0x14   : > { %p2587_p8 = pnand %p1785_p5, %p227_p7  ;;  %s2482_s14 = smov [#allocation7]  }
  0x15   : > { %3584 = sst [smem:[#allocation19_spill]] %s3583_s12  ;;  %s242_s15 = sshll.u32 %s2482_s14, 4  ;;  %s2591_s15 = int_to_ptr.vmem [resolvable:$true] %s242_s15 }
  0x16   : > { %s3585_s13 = scalar_select %p2587_p8, 1, 0 }
  0x17   : > { %p2009_p9 = pneg %p2587_p8  ;;  %s2483_s17 = smov [#allocation9]  }
  0x18   : > { %s258_s18 = sshll.u32 %s2483_s17, 4  ;;  %s2484_s19 = smov [#allocation10]   ;;  %s2602_s18 = int_to_ptr.vmem [resolvable:$true] %s258_s18 }
  0x19   : > { %p2598_p11 = pnand %p2009_p9, %p2567_p1  ;;  %s2604_s20 = sshll.u32 %s2484_s19, 4  ;;  %s275_s20 = int_to_ptr.vmem [resolvable:$true] %s2604_s20 }
  0x1a   : > { %s2276_s23 = scalar_lea.hbm %s3563_s1, 1024 }
  0x1b   : > { %p2277_p12 = scmp.ne.s32.totalorder %s3563_s1, %s2276_s23  ;;  %p2614_p13 = pneg %p2598_p11 }
  0x1c   : > { %p2283_p5 = scmp.lt.u32.totalorder %s2276_s23, %s3563_s1 }
  0x1d   : > { %p2279_p0 = pnand %p2614_p13, %p2277_p12 }
  0x1f   : > { %p2280_p3 = pneg %p2279_p0 }
  0x21   : > { %p2285_p7 = pnand %p2283_p5, %p2280_p3 }
  0x23   : > { %2288 = shalt.err (!%p2285_p7)
}
  0x24   : > { %s2289_s21 = scalar_lea.vmem %s2591_s15, 1024  ;;  %p2297_p1 = scmp.lt.s32.totalorder %s2591_s15, %s2591_s15 }
  0x25   : > { %p2290_p9 = scmp.ne.s32.totalorder %s2591_s15, %s2289_s21  ;;  %p2298_p4 = scmp.lt.s32.totalorder %s2289_s21, %s2289_s21 }
  0x27   : > { %p2292_p10 = pnand %p2290_p9, %p2614_p13  ;;  %p2299_p12 = por %p2298_p4, %p2297_p1 }
  0x29   : > { %p2293_p6 = pneg %p2292_p10 }
  0x2b   : > { %p2300_p0 = pnand %p2299_p12, %p2293_p6 }
  0x2d   : > { %2303 = shalt.err (!%p2300_p0)
}
  0x2e   : > { %s2485_s22 = smov 64   ;;  %s2486_s23 = smov 4  }
  0x2f   : > { %2012 = dma.hbm_to_vmem [thread:$0]  (!%p2598_p11), %s3563_s1, 1024, %s2591_s15, [#allocation8], %s2485_s22, %s2485_s22, %s2486_s23  }
  0x30   : > { %s2304_s21 = scalar_lea.hbm %s3565_s3, 1024 }
  0x31   : > { %p2305_p1 = scmp.ne.s32.totalorder %s3565_s3, %s2304_s21  ;;  %p2311_p10 = scmp.lt.u32.totalorder %s2304_s21, %s3565_s3 }
  0x33   : > { %p2307_p4 = pnand %p2305_p1, %p2614_p13 }
  0x35   : > { %p2308_p6 = pneg %p2307_p4 }
  0x37   : > { %p2313_p3 = pnand %p2311_p10, %p2308_p6 }
  0x39   : > { %2316 = shalt.err (!%p2313_p3)
}
  0x3a   : > { %s2317_s15 = scalar_lea.vmem %s2602_s18, 1024  ;;  %p2325_p12 = scmp.lt.s32.totalorder %s2602_s18, %s2602_s18 }
  0x3b   : > { %p2318_p5 = scmp.ne.s32.totalorder %s2602_s18, %s2317_s15  ;;  %p2326_p0 = scmp.lt.s32.totalorder %s2317_s15, %s2317_s15 }
  0x3d   : > { %p2320_p7 = pnand %p2318_p5, %p2614_p13  ;;  %p2327_p1 = por %p2326_p0, %p2325_p12 }
  0x3f   : > { %p2321_p9 = pneg %p2320_p7 }
  0x41   : > { %p2328_p4 = pnand %p2327_p1, %p2321_p9 }
  0x43   : > { %2331 = shalt.err (!%p2328_p4)
}
  0x44   : > { %2015 = dma.hbm_to_vmem [thread:$0]  (!%p2598_p11), %s3565_s3, 1024, %s2602_s18, [#allocation8], %s2485_s22, %s2485_s22, %s2486_s23  }
  0x45   : > { %s2332_s30 = scalar_lea.hbm %s3567_s5, 1024 }
  0x46   : > { %p2333_p6 = scmp.ne.s32.totalorder %s3567_s5, %s2332_s30  ;;  %p2339_p5 = scmp.lt.u32.totalorder %s2332_s30, %s3567_s5 }
  0x48   : > { %p2335_p10 = pnand %p2333_p6, %p2614_p13 }
  0x4a   : > { %p2336_p3 = pneg %p2335_p10 }
  0x4c   : > { %p2341_p7 = pnand %p2339_p5, %p2336_p3 }
  0x4e   : > { %2344 = shalt.err (!%p2341_p7)
}
  0x4f   : > { %s2345_s15 = scalar_lea.vmem %s275_s20, 1024  ;;  %p2353_p1 = scmp.lt.s32.totalorder %s275_s20, %s275_s20 }
  0x50   : > { %p2346_p9 = scmp.ne.s32.totalorder %s275_s20, %s2345_s15  ;;  %p2354_p4 = scmp.lt.s32.totalorder %s2345_s15, %s2345_s15 }
  0x52   : > { %p2348_p12 = pnand %p2346_p9, %p2614_p13  ;;  %p2355_p8 = por %p2354_p4, %p2353_p1 }
  0x54   : > { %p2349_p0 = pneg %p2348_p12 }
  0x56   : > { %p2356_p2 = pnand %p2355_p8, %p2349_p0 }
  0x58   : > { %2359 = shalt.err (!%p2356_p2)
}
  0x59   : > { %2018 = dma.hbm_to_vmem [thread:$0]  (!%p2598_p11), %s3567_s5, 1024, %s275_s20, [#allocation11], %s2485_s22, %s2485_s22, %s2486_s23  }
  0x5a   : > { %s46_s14 = sadd.s32 1, %s2468_s26  ;;  %s37_s16 = sadd.s32 1, %s2476_s28 }
  0x5b   : > { %p53_p2 = scmp.ne.s32.totalorder %s2468_s26, %s2464_s25  ;;  %p39_p8 = scmp.ge.s32.totalorder %s37_s16, 2 }
  0x5c   : > { %p54_p13 = scmp.eq.s32.totalorder %s2480_s29, 0  ;;  %p3588_p6 = scmp.ne.s32.totalorder %s3581_s10, 0 }
  0x5d   : > { %p2030_p3 = scmp.lt.s32.totalorder %s2480_s29, 2  ;;  %s3674_s16 = smov (%p39_p8, %s37_s16), 0 }
  0x5e   : > { %p2693_p10 = por %p3588_p6, %p53_p2  ;;  %p55_p5 = por %p54_p13, %p53_p2 }
  0x5f   : > { %s291_s27 = sand.u32 1, %s2468_s26   ;;  %s41_s12 = ssub.s32 %s2476_s28, %s3674_s16 }
  0x60   : > { %p44_p7 = scmp.eq.s32.totalorder %s41_s12, 0  ;;  %s1790_s20 = sshll.u32 %s291_s27, 7 }
  0x61   : > { %s1831_s22 = sshll.u32 %s2476_s28, 11  ;;  %s295_s17 = scalar_lea.vmem [#allocation4], %s1790_s20 }
  0x62   : > { %s2705_s23 = scalar_select %p44_p7, %s2468_s26, %s46_s14  }
  0x63   : > { %s2710_s10 = scalar_lea.hbm %s3562_s0, %s1831_s22  ;;  %s303_s19 = sshll.u32 %s295_s17, 4  ;;  %s2712_s19 = int_to_ptr.vmem [resolvable:$true] %s303_s19 }
  0x64   : > { %p2716_p11 = pnand %p2030_p3, %p55_p5  ;;  %s2720_s15 = scalar_lea.sflag [#allocation5], %s291_s27 }
  0x65   : > { %s2360_s18 = scalar_lea.hbm %s2710_s10, 2048  ;;  %s2365_s12 = scalar_lea.hbm %s3562_s0, 4096 }
  0x66   : > { %p2361_p9 = scmp.ne.s32.totalorder %s2710_s10, %s2360_s18  ;;  %p2362_p12 = pneg %p2716_p11 }
  0x67   : > { %p2366_p4 = scmp.lt.u32.totalorder %s2710_s10, %s3562_s0  ;;  %p2367_p2 = scmp.lt.u32.totalorder %s2365_s12, %s2360_s18 }
  0x68   : > { %p2363_p0 = pnand %p2362_p12, %p2361_p9  ;;  %p2369_p13 = scmp.lt.u32.totalorder %s2360_s18, %s2710_s10 }
  0x69   : > { %p2368_p8 = por %p2367_p2, %p2366_p4 }
  0x6a   : > { %p2364_p1 = pneg %p2363_p0 }
  0x6b   : > { %p2370_p6 = por %p2369_p13, %p2368_p8 }
  0x6d   : > { %p2371_p3 = pnand %p2370_p6, %p2364_p1 }
  0x6f   : > { %2374 = shalt.err (!%p2371_p3)
}
  0x70   : > { %s2375_s27 = scalar_lea.vmem %s2712_s19, 2048  ;;  %s2487_s30 = smov [#allocation4]  }
  0x71   : > { %p2376_p5 = scmp.ne.s32.totalorder %s2712_s19, %s2375_s27  ;;  %s2380_s8 = sshll.u32 %s2487_s30, 4  ;;  %s2381_s8 = int_to_ptr.vmem [resolvable:$false] %s2380_s8 }
  0x72   : > { %s2382_s17 = scalar_lea.vmem %s2381_s8, 4096  ;;  %p2383_p0 = scmp.lt.s32.totalorder %s2712_s19, %s2381_s8 }
  0x73   : > { %p2378_p7 = pnand %p2376_p5, %p2362_p12  ;;  %p2384_p4 = scmp.lt.s32.totalorder %s2382_s17, %s2375_s27 }
  0x75   : > { %p2379_p9 = pneg %p2378_p7  ;;  %p2385_p2 = por %p2384_p4, %p2383_p0 }
  0x77   : > { %p2386_p8 = pnand %p2385_p2, %p2379_p9 }
  0x79   : > { %2389 = shalt.err (!%p2386_p8)
}
  0x7a   : > { %s2488_s18 = smov 128   ;;  %s2489_s7 = smov 8  }
  0x7b   : > { %2022 = dma.hbm_to_vmem [thread:$0]  (!%p2716_p11), %s2710_s10, 2048, %s2712_s19, %s2720_s15, %s2488_s18, %s2488_s18, %s2489_s7  }
  0x7c   : > { %p3591_p12 = scmp.ne.s32.totalorder %s3585_s13, 0 }
  0x7d   : > { %s2751_s14 = sand.u32 (!%p3591_p12), 1, %s2464_s25   ;;  %p3592_p1 = scmp.ne.s32.totalorder (!%p3591_p12), %s3582_s11, 0 }
  0x7e   : > { %315 = sbr.rel (%p3591_p12) target bundleno = 986 (0x3da), region = 48  ;;  %s1794_s12 = sshll.u32 (!%p3591_p12), %s2751_s14, 7 }
  0x7f   : > { %s318_s20 = scalar_lea.sflag (!%p3591_p12), [#allocation5], %s2751_s14  ;;  %s2757_s22 = scalar_lea.vmem (!%p3591_p12), [#allocation4], %s1794_s12 }
  0x85   : > { %2443 = dma.done.wait (%p3592_p1), %s318_s20, 2048  }
  0x86   : > { %2445 = vsyncadd (%p3592_p1), %s318_s20, 4294965248  ;;  %p3593_p11 = scmp.ne.s32.totalorder %s3580_s9, 0 }
  0x88   : > { %2447 = dma.done.wait (%p3593_p11), [#allocation8], 2048  }
  0x89   : > { %2449 = vsyncadd (%p3593_p11), [#allocation8], 4294965248 }
  0x8a   : > { %2451 = dma.done.wait (%p3593_p11), [#allocation11], 1024  }
  0x8b   : > { %2453 = vsyncadd (%p3593_p11), [#allocation11], 4294966272  ;;  %v2092_v0 = vld [vmem:[#allocation7] sm:$0xff]   ;;  %v2093_v1 = vld [vmem:[#allocation7 + $0x8] sm:$0xff]   ;;  %s3488_s15 = scalar_lea.vmem [#allocation12], %s1794_s12  ;;  %s3662_s27 = sld [smem:[#allocation18_spill]] }
  0x8c   : > { %1881 = vmatprep.subr.bf16.mxu0 %v2092_v0  ;;  %v2094_v2 = vld [vmem:[#allocation7 + $0x10] sm:$0xff]   ;;  %v2095_v3 = vld [vmem:[#allocation7 + $0x18] sm:$0xff]   ;;  %v388_v4 = vld [vmem:[%s2757_s22] sm:$0xff]  ;;  %s1669_s8 = sshll.u32 %s3488_s15, 4  ;;  %s3663_s7 = sld [smem:[#allocation20_spill]]  ;;  %s3510_s8 = int_to_ptr.vmem [resolvable:$true] %s1669_s8 }
  0x8d   : > { %1882 = vmatpush3.bf16.msra.mxu0 %v2092_v0  ;;  %v389_v5 = vld [vmem:[%s2757_s22 + $0x8] sm:$0xff]  ;;  %v2774_v6 = vld [vmem:[%s2757_s22 + $0x10] sm:$0xff]  ;;  %v404_v7 = vadd.f32 1.0, %v388_v4  ;;  %v410_v8 = vand.u32 2147483647, %v388_v4  ;;  %v407_v10 = vmul.f32 -0.5, %v388_v4 }
  0x8e   : > { %1883 = vmatprep.subr.bf16.mxu0 %v2093_v1  ;;  %v413_v9 = vadd.f32 1.0, %v389_v5  ;;  %v416_v11 = vmul.f32 -0.5, %v389_v5  ;;  %v419_v12 = vand.u32 2147483647, %v389_v5  ;;  %v2777_v13 = vld [vmem:[%s2757_s22 + $0x18] sm:$0xff]  ;;  %v422_v14 = vadd.f32 1.0, %v2774_v6 }
  0x8f   : > { %2116 = vlog2.f32 %v404_v7  ;;  %v2096_v15 = vld [vmem:[#allocation7 + $0x20] sm:$0xff]   ;;  %v425_v16 = vmul.f32 -0.5, %v2774_v6  ;;  %v428_v17 = vand.u32 2147483647, %v2774_v6  ;;  %vm2785_vm0 = vcmp.lt.f32.partialorder %v410_v8, 0.0004427343 }
  0x90   : > { %2118 = vlog2.f32 %v413_v9  ;;  %v2783_v18 = vld [vmem:[%s2757_s22 + $0x20] sm:$0xff]  ;;  %v431_v20 = vadd.f32 1.0, %v2777_v13  ;;  %v2791_v21 = vld [vmem:[%s2757_s22 + $0x28] sm:$0xff]  ;;  %v408_v22 = vadd.f32 1.0, %v407_v10  ;;  %v417_v23 = vadd.f32 1.0, %v416_v11  ;;  %v2802_v29 = vld [vmem:[%s2757_s22 + $0x30] sm:$0xff] }
  0x91   : > { %1884 = vmatpush3.bf16.msra.mxu0 %v2093_v1  ;;  %2120 = vlog2.f32 %v422_v14  ;;  %vm2793_vm1 = vcmp.lt.f32.partialorder %v419_v12, 0.0004427343  ;;  %v437_v25 = vand.u32 2147483647, %v2777_v13  ;;  %v434_v26 = vmul.f32 -0.5, %v2777_v13  ;;  %v2097_v30 = vld [vmem:[#allocation7 + $0x28] sm:$0xff]  }
  0x92   : > { %1885 = vmatprep.subr.bf16.mxu0 %v2094_v2  ;;  %2122 = vlog2.f32 %v431_v20  ;;  %v440_v27 = vadd.f32 1.0, %v2783_v18  ;;  %v446_v28 = vand.u32 2147483647, %v2783_v18  ;;  %v426_v31 = vadd.f32 1.0, %v425_v16  ;;  %v2817_v38 = vld [vmem:[%s2757_s22 + $0x38] sm:$0xff]  ;;  %v2098_v39 = vld [vmem:[#allocation7 + $0x30] sm:$0xff]  }
  0x93   : > { %vm2804_vm2 = vcmp.lt.f32.partialorder %v428_v17, 0.0004427343  ;;  %v443_v33 = vmul.f32 -0.5, %v2783_v18  ;;  %v449_v34 = vadd.f32 1.0, %v2791_v21  ;;  %vm2810_vm3 = vcmp.lt.f32.partialorder %v437_v25, 0.0004427343 }
  0x94   : > { %2124 = vlog2.f32 %v440_v27  ;;  %v452_v36 = vmul.f32 -0.5, %v2791_v21  ;;  %v455_v37 = vand.u32 2147483647, %v2791_v21  ;;  %v409_v40 = vmul.f32 %v408_v22, %v388_v4  ;;  %v2821_v42 = vld [vmem:[%s2757_s22 + $0x40] sm:$0xff]  ;;  %v2836_v54 = vld [vmem:[%s2757_s22 + $0x48] sm:$0xff]  ;;  %v2099_v57 = vld [vmem:[#allocation7 + $0x38] sm:$0xff]  }
  0x95   : > { %1886 = vmatpush3.bf16.msra.mxu0 %v2094_v2  ;;  %2126 = vlog2.f32 %v449_v34  ;;  %v458_v41 = vadd.f32 1.0, %v2802_v29  ;;  %v435_v43 = vadd.f32 1.0, %v434_v26  ;;  %vm2823_vm4 = vcmp.lt.f32.partialorder %v446_v28, 0.0004427343  ;;  %v2843_v1 = vld [vmem:[%s2757_s22 + $0x50] sm:$0xff]  ;;  %v2865_v20 = vld [vmem:[%s2757_s22 + $0x58] sm:$0xff] }
  0x96   : > { %1887 = vmatprep.subr.bf16.mxu0 %v2095_v3  ;;  %v461_v45 = vmul.f32 -0.5, %v2802_v29  ;;  %v464_v46 = vand.u32 2147483647, %v2802_v29  ;;  %v418_v47 = vmul.f32 %v417_v23, %v389_v5  ;;  %v444_v48 = vadd.f32 1.0, %v443_v33  ;;  %v2881_v34 = vld [vmem:[%s2757_s22 + $0x60] sm:$0xff]  ;;  %s1832_s30 = sshll.u32 %s3662_s27, 11 }
  0x97   : > { %2128 = vlog2.f32 %v458_v41  ;;  %v467_v49 = vadd.f32 1.0, %v2817_v38  ;;  %v453_v51 = vadd.f32 1.0, %v452_v36  ;;  %vm2830_vm5 = vcmp.lt.f32.partialorder %v455_v37, 0.0004427343  ;;  %s3508_s12 = scalar_lea.hbm %s3663_s7, %s1832_s30  ;;  %s1656_s20 = scalar_lea.sflag [#allocation6], %s2751_s14 }
  0x98   : > { %v470_v53 = vmul.f32 -0.5, %v2817_v38  ;;  %v476_v55 = vadd.f32 1.0, %v2821_v42  ;;  %v427_v59 = vmul.f32 %v426_v31, %v2774_v6  ;;  %v473_v60 = vand.u32 2147483647, %v2817_v38  ;;  %s2490_s9 = smov [#allocation12]  }
  0x99   : > { %1888 = vmatpush3.bf16.msra.mxu0 %v2095_v3  ;;  %v2117_v50 = vpop.eup %2116  ;;  %2130 = vlog2.f32 %v467_v49  ;;  %v462_v63 = vadd.f32 1.0, %v461_v45  ;;  %v479_v0 = vmul.f32 -0.5, %v2821_v42  ;;  %v436_v4 = vmul.f32 %v435_v43, %v2777_v13  ;;  %v401_v43 = vld [vmem:[%s2757_s22 + $0x68] sm:$0xff]  ;;  %s2394_s11 = sshll.u32 %s2490_s9, 4  ;;  %s2395_s11 = int_to_ptr.vmem [resolvable:$false] %s2394_s11 }
  0x9a   : > { %1889 = vmatprep.subr.bf16.mxu0 %v2096_v15  ;;  %v2119_v56 = vpop.eup %2118  ;;  %v406_v58 = vmul.f32 0.6931472, %v2117_v50  ;;  %2132 = vlog2.f32 %v476_v55  ;;  %vm2848_vm6 = vcmp.lt.f32.partialorder %v464_v46, 0.0004427343  ;;  %v471_v8 = vadd.f32 1.0, %v470_v53  ;;  %v2902_v53 = vld [vmem:[%s2757_s22 + $0x78] sm:$0xff]  ;;  %p2397_p5 = scmp.lt.s32.totalorder %s3510_s8, %s2395_s11 }
  0x9b   : > { %v2121_v61 = vpop.eup %2120  ;;  %v415_v62 = vmul.f32 0.6931472, %v2119_v56  ;;  %v482_v9 = vand.u32 2147483647, %v2821_v42  ;;  %v485_v10 = vadd.f32 1.0, %v2836_v54  ;;  %v445_v14 = vmul.f32 %v444_v48, %v2783_v18  ;;  %v2892_v48 = vld [vmem:[%s2757_s22 + $0x70] sm:$0xff] }
  0x9c   : > { %v412_v2 = vsel %vm2785_vm0, %v409_v40, %v406_v58  ;;  %v424_v3 = vmul.f32 0.6931472, %v2121_v61  ;;  %v2123_v6 = vpop.eup %2122  ;;  %v454_v13 = vmul.f32 %v453_v51, %v2791_v21  ;;  %vm2860_vm7 = vcmp.lt.f32.partialorder %v473_v60, 0.0004427343  ;;  %v2105_v51 = vld [vmem:[#allocation9 + $0x28] sm:$0xff]   ;;  %s2390_s22 = scalar_lea.vmem %s3510_s8, 2048 }
  0x9d   : > { %1890 = vmatpush3.bf16.msra.mxu0 %v2096_v15  ;;  %v421_v7 = vsel %vm2793_vm1, %v418_v47, %v415_v62  ;;  %v433_v12 = vmul.f32 0.6931472, %v2123_v6  ;;  %v480_v19 = vadd.f32 1.0, %v479_v0  ;;  %2134 = vlog2.f32 %v485_v10  ;;  %p2391_p13 = scmp.ne.s32.totalorder %s3510_s8, %s2390_s22  ;;  %s2396_s13 = scalar_lea.vmem %s2395_s11, 4096 }
  0x9e   : > { %1891 = vmatprep.subr.bf16.mxu0 %v2097_v30  ;;  %v564_v11 = vpack.c.bf16 %v421_v7, %v412_v2  ;;  %v2125_v15 = vpop.eup %2124  ;;  %v430_v16 = vsel %vm2804_vm2, %v427_v59, %v424_v3  ;;  %v488_v23 = vmul.f32 -0.5, %v2836_v54  ;;  %v494_v24 = vadd.f32 1.0, %v2843_v1  ;;  %p2398_p7 = scmp.lt.s32.totalorder %s2396_s13, %s2390_s22 }
  0x9f   : > { %v2127_v22 = vpop.eup %2126  ;;  %v439_v18 = vsel %vm2810_vm3, %v436_v4, %v433_v12  ;;  %v442_v21 = vmul.f32 0.6931472, %v2125_v15  ;;  %v463_v26 = vmul.f32 %v462_v63, %v2802_v29  ;;  %v472_v27 = vmul.f32 %v471_v8, %v2817_v38  ;;  %p2392_p6 = pnand %p2391_p13, %p2693_p10 }
  0xa0   : > { %1897 = vmatprep.mubr.bf16.mxu0 %v564_v11  ;;  %v451_v25 = vmul.f32 0.6931472, %v2127_v22  ;;  %vm2873_vm8 = vcmp.lt.f32.partialorder %v482_v9, 0.0004427343  ;;  %v565_v31 = vpack.c.bf16 %v439_v18, %v430_v16  ;;  %v491_v33 = vand.u32 2147483647, %v2836_v54  ;;  %p2399_p9 = por %p2398_p7, %p2397_p5 }
  0xa1   : > { %1892 = vmatpush3.bf16.msra.mxu0 %v2097_v30  ;;  %v2129_v30 = vpop.eup %2128  ;;  %v448_v32 = vsel %vm2823_vm4, %v445_v14, %v442_v21  ;;  %2136 = vlog2.f32 %v494_v24  ;;  %v497_v36 = vmul.f32 -0.5, %v2843_v1  ;;  %v503_v37 = vadd.f32 1.0, %v2865_v20  ;;  %p2393_p3 = pneg %p2392_p6 }
  0xa2   : > { %1893 = vmatprep.subr.bf16.mxu0 %v2098_v39  ;;  %v457_v29 = vsel %vm2830_vm5, %v454_v13, %v451_v25  ;;  %v460_v35 = vmul.f32 0.6931472, %v2129_v30  ;;  %v489_v40 = vadd.f32 1.0, %v488_v23  ;;  %v500_v41 = vand.u32 2147483647, %v2843_v1 }
  0xa3   : > { %v2131_v38 = vpop.eup %2130  ;;  %v481_v46 = vmul.f32 %v480_v19, %v2821_v42  ;;  %2138 = vlog2.f32 %v503_v37  ;;  %v506_v47 = vmul.f32 -0.5, %v2865_v20  ;;  %vm2896_vm9 = vcmp.lt.f32.partialorder %v491_v33, 0.0004427343  ;;  %p2400_p0 = pnand %p2399_p9, %p2393_p3 }
  0xa4   : > { %v2133_v44 = vpop.eup %2132  ;;  %v469_v45 = vmul.f32 0.6931472, %v2131_v38  ;;  %v466_v49 = vsel %vm2848_vm6, %v463_v26, %v460_v35  ;;  %v512_v52 = vadd.f32 1.0, %v2881_v34  ;;  %v498_v55 = vadd.f32 1.0, %v497_v36 }
  0xa5   : > { %1894 = vmatpush3.bf16.msra.mxu0 %v2098_v39  ;;  %v566_v39 = vpack.c.bf16 %v457_v29, %v448_v32  ;;  %v478_v50 = vmul.f32 0.6931472, %v2133_v44  ;;  %v509_v56 = vand.u32 2147483647, %v2865_v20  ;;  %v490_v58 = vmul.f32 %v489_v40, %v2836_v54 }
  0xa6   : > { %1895 = vmatprep.subr.bf16.mxu0 %v2099_v57  ;;  %v475_v42 = vsel %vm2860_vm7, %v472_v27, %v469_v45  ;;  %vm2908_vm10 = vcmp.lt.f32.partialorder %v500_v41, 0.0004427343  ;;  %2140 = vlog2.f32 %v512_v52  ;;  %v507_v62 = vadd.f32 1.0, %v506_v47  ;;  %v2101_v47 = vld [vmem:[#allocation9 + $0x8] sm:$0xff]   ;;  %v2106_v52 = vld [vmem:[#allocation9 + $0x30] sm:$0xff]  }
  0xa7   : > { %v2135_v60 = vpop.eup %2134  ;;  %v567_v61 = vpack.c.bf16 %v475_v42, %v466_v49  ;;  %v515_v63 = vmul.f32 -0.5, %v2881_v34  ;;  %v484_v0 = vsel %vm2873_vm8, %v481_v46, %v478_v50  ;;  %v524_v3 = vmul.f32 -0.5, %v401_v43  ;;  %v2100_v46 = vld [vmem:[#allocation9] sm:$0xff]   ;;  %v2103_v49 = vld [vmem:[#allocation9 + $0x18] sm:$0xff]  }
  0xa8   : > { %v487_v2 = vmul.f32 0.6931472, %v2135_v60  ;;  %v530_v4 = vadd.f32 1.0, %v2892_v48  ;;  %vm2916_vm11 = vcmp.lt.f32.partialorder %v509_v56, 0.0004427343  ;;  %v539_v6 = vadd.f32 1.0, %v2902_v53  ;;  %1913 = vmatprep.subr.bf16.mxu1 %v2100_v46 }
  0xa9   : > { %1896 = vmatpush3.bf16.msra.mxu0 %v2099_v57  ;;  %v521_v57 = vadd.f32 1.0, %v401_v43  ;;  %v518_v5 = vand.u32 2147483647, %v2881_v34  ;;  %v499_v9 = vmul.f32 %v498_v55, %v2843_v1  ;;  %v533_v10 = vmul.f32 -0.5, %v2892_v48  ;;  %1914 = vmatpush3.bf16.msra.mxu1 %v2100_v46  ;;  %v2104_v50 = vld [vmem:[#allocation9 + $0x20] sm:$0xff]  }
  0xaa   : > { %v493_v8 = vsel %vm2896_vm9, %v490_v58, %v487_v2  ;;  %v508_v14 = vmul.f32 %v507_v62, %v2865_v20  ;;  %v516_v13 = vadd.f32 1.0, %v515_v63  ;;  %v525_v15 = vadd.f32 1.0, %v524_v3  ;;  %1915 = vmatprep.subr.bf16.mxu1 %v2101_v47  ;;  %v2946_v42 = vld [vmem:[%s3564_s2] ss:$0 sm:$0xff] }
  0xab   : > { %2142 = vlog2.f32 %v521_v57  ;;  %v2137_v7 = vpop.eup %2136  ;;  %v568_v11 = vpack.c.bf16 %v493_v8, %v484_v0  ;;  %v527_v16 = vand.u32 2147483647, %v401_v43  ;;  %v542_v17 = vmul.f32 -0.5, %v2902_v53 }
  0xac   : > { %1898 = vmatmul.mubr.bf16.vlgmr.msra.gmra.mrb[0].mxu0 %v565_v31  ;;  %2144 = vlog2.f32 %v530_v4  ;;  %v496_v12 = vmul.f32 0.6931472, %v2137_v7  ;;  %v534_v18 = vadd.f32 1.0, %v533_v10  ;;  %v517_v21 = vmul.f32 %v516_v13, %v2881_v34 }
  0xad   : > { %1901 = vmatprep.mubr.bf16.mxu0 %v566_v39  ;;  %2146 = vlog2.f32 %v539_v6  ;;  %v2139_v19 = vpop.eup %2138  ;;  %vm2933_vm12 = vcmp.lt.f32.partialorder %v518_v5, 0.0004427343  ;;  %v526_v25 = vmul.f32 %v525_v15, %v401_v43  ;;  %v536_v26 = vand.u32 2147483647, %v2892_v48  ;;  %1916 = vmatpush3.bf16.msra.mxu1 %v2101_v47 }
  0xae   : > { %v502_v22 = vsel %vm2908_vm10, %v499_v9, %v496_v12  ;;  %v505_v1 = vmul.f32 0.6931472, %v2139_v19  ;;  %vm528_vm13 = vcmp.lt.f32.partialorder %v527_v16, 0.0004427343  ;;  %v543_v31 = vadd.f32 1.0, %v542_v17 }
  0xaf   : > { %v545_v33 = vand.u32 2147483647, %v2902_v53  ;;  %v535_v29 = vmul.f32 %v534_v18, %v2892_v48  ;;  %vm537_vm14 = vcmp.lt.f32.partialorder %v536_v26, 0.0004427343  ;;  %v2102_v48 = vld [vmem:[#allocation9 + $0x10] sm:$0xff]  }
  0xb0   : > { %v2141_v23 = vpop.eup %2140  ;;  %v511_v20 = vsel %vm2916_vm11, %v508_v14, %v505_v1  ;;  %v544_v39 = vmul.f32 %v543_v31, %v2902_v53  ;;  %1917 = vmatprep.subr.bf16.mxu1 %v2102_v48  ;;  %v2107_v53 = vld [vmem:[#allocation9 + $0x38] sm:$0xff]  }
  0xb1   : > { %v569_v28 = vpack.c.bf16 %v511_v20, %v502_v22  ;;  %v514_v30 = vmul.f32 0.6931472, %v2141_v23  ;;  %vm546_vm15 = vcmp.lt.f32.partialorder %v545_v33, 0.0004427343  ;;  %1918 = vmatpush3.bf16.msra.mxu1 %v2102_v48 }
  0xb2   : > { %1919 = vmatprep.subr.bf16.mxu1 %v2103_v49 }
  0xb3   : > { %v520_v34 = vsel %vm2933_vm12, %v517_v21, %v514_v30 }
  0xb4   : > { %1902 = vmatmul.mubr.bf16.gmra.mrb[4].mxu0 %v567_v61 }
  0xb5   : > { %1905 = vmatprep.mubr.bf16.mxu0 %v568_v11  ;;  %v2143_v27 = vpop.eup %2142  ;;  %1920 = vmatpush3.bf16.msra.mxu1 %v2103_v49 }
  0xb6   : > { %v523_v32 = vmul.f32 0.6931472, %v2143_v27  ;;  %v2145_v35 = vpop.eup %2144  ;;  %1921 = vmatprep.subr.bf16.mxu1 %v2104_v50 }
  0xb7   : > { %v532_v38 = vmul.f32 0.6931472, %v2145_v35  ;;  %v2147_v40 = vpop.eup %2146 }
  0xb8   : > { %v529_v36 = vsel %vm528_vm13, %v526_v25, %v523_v32  ;;  %v541_v43 = vmul.f32 0.6931472, %v2147_v40 }
  0xb9   : > { %v570_v37 = vpack.c.bf16 %v529_v36, %v520_v34  ;;  %v538_v41 = vsel %vm537_vm14, %v535_v29, %v532_v38  ;;  %1922 = vmatpush3.bf16.msra.mxu1 %v2104_v50 }
  0xba   : > { %v547_v44 = vsel %vm546_vm15, %v544_v39, %v541_v43  ;;  %1923 = vmatprep.subr.bf16.mxu1 %v2105_v51 }
  0xbb   : > { %v571_v45 = vpack.c.bf16 %v547_v44, %v538_v41 }
  0xbc   : > { %1906 = vmatmul.mubr.bf16.gmra.mrb[8].mxu0 %v569_v28 }
  0xbd   : > { %1909 = vmatprep.mubr.bf16.mxu0 %v570_v37  ;;  %1924 = vmatpush3.bf16.msra.mxu1 %v2105_v51 }
  0xbe   : > { %1925 = vmatprep.subr.bf16.mxu1 %v2106_v52 }
  0xc1   : > { %1926 = vmatpush3.bf16.msra.mxu1 %v2106_v52 }
  0xc2   : > { %1927 = vmatprep.subr.bf16.mxu1 %v2107_v53 }
  0xc4   : > { %1910 = vmatmul.mubr.bf16.gmra.mrb[12].mxu0 %v571_v45 }
  0xc5   : > { %1928 = vmatpush3.bf16.msra.mxu1 %v2107_v53 }
 0x17f   : > { %v1899_v55 = vpop.f32.mrb[0].mxu0 }
 0x180   : > { %v2949_v56 = vadd.f32 %v1899_v55, %v2946_v42  ;;  %v670_v57 = vpop.f32.mrb[1].mxu0 }
 0x181   : > { %v1900_v58 = vpop.f32.mrb[2].mxu0  ;;  %v2963_v8 = vadd.f32 %v2946_v42, %v670_v57 }
 0x182   : > { %v825_v59 = vand.u32 2147483647, %v2949_v56  ;;  %v2953_v60 = vadd.f32 %v1900_v58, %v2946_v42  ;;  %v673_v61 = vpop.f32.mrb[3].mxu0 }
 0x183   : > { %v2970_v12 = vadd.f32 %v2946_v42, %v673_v61  ;;  %v823_v22 = vand.u32 2147483647, %v2963_v8 }
 0x184   : > { %v841_v62 = vsub.f32 0.0, %v825_v59  ;;  %v826_v63 = vand.u32 2147483647, %v2953_v60  ;;  %v809_v59 = vmax.f32 %v2949_v56, 0.0 }
 0x185   : > { %v824_v21 = vand.u32 2147483647, %v2970_v12  ;;  %v839_v33 = vsub.f32 0.0, %v823_v22 }
 0x186   : > { %v859_v0 = vmul.f32 1.442695, %v841_v62  ;;  %v842_v2 = vsub.f32 0.0, %v826_v63 }
 0x187   : > { %v1903_v3 = vpop.f32.mrb[4].mxu0  ;;  %v840_v36 = vsub.f32 0.0, %v824_v21  ;;  %v855_v41 = vmul.f32 1.442695, %v839_v33 }
 0x188   : > { %2148 = vpow2.f32 %v859_v0  ;;  %v861_v4 = vmul.f32 1.442695, %v842_v2  ;;  %v2957_v54 = vadd.f32 %v1903_v3, %v2946_v42  ;;  %v686_v5 = vpop.f32.mrb[5].mxu0  ;;  %v810_v3 = vmax.f32 %v2953_v60, 0.0 }
 0x189   : > { %v2960_v6 = vadd.f32 %v2946_v42, %v686_v5  ;;  %v1904_v7 = vpop.f32.mrb[6].mxu0  ;;  %v857_v45 = vmul.f32 1.442695, %v840_v36 }
 0x18a   : > { %v829_v9 = vand.u32 2147483647, %v2957_v54  ;;  %v2967_v10 = vadd.f32 %v1904_v7, %v2946_v42  ;;  %v689_v11 = vpop.f32.mrb[7].mxu0  ;;  %2150 = vpow2.f32 %v861_v4  ;;  %v813_v4 = vmax.f32 %v2957_v54, 0.0 }
 0x18b   : > { %v827_v14 = vand.u32 2147483647, %v2960_v6  ;;  %v2974_v13 = vadd.f32 %v2946_v42, %v689_v11  ;;  %v811_v5 = vmax.f32 %v2960_v6, 0.0 }
 0x18c   : > { %v845_v15 = vsub.f32 0.0, %v829_v9  ;;  %v830_v16 = vand.u32 2147483647, %v2967_v10  ;;  %v814_v7 = vmax.f32 %v2967_v10, 0.0 }
 0x18d   : > { %v843_v17 = vsub.f32 0.0, %v827_v14  ;;  %v828_v19 = vand.u32 2147483647, %v2974_v13  ;;  %v812_v11 = vmax.f32 %v2974_v13, 0.0 }
 0x18e   : > { %v867_v1 = vmul.f32 1.442695, %v845_v15  ;;  %v846_v18 = vsub.f32 0.0, %v830_v16 }
 0x18f   : > { %v863_v23 = vmul.f32 1.442695, %v843_v17  ;;  %v844_v20 = vsub.f32 0.0, %v828_v19  ;;  %v1907_v24 = vpop.f32.mrb[8].mxu0 }
 0x190   : > { %2152 = vpow2.f32 %v867_v1  ;;  %v869_v25 = vmul.f32 1.442695, %v846_v18  ;;  %v2981_v26 = vadd.f32 %v1907_v24, %v2946_v42  ;;  %v702_v27 = vpop.f32.mrb[9].mxu0 }
 0x191   : > { %2154 = vpow2.f32 %v863_v23  ;;  %v865_v28 = vmul.f32 1.442695, %v844_v20  ;;  %v2984_v30 = vadd.f32 %v2946_v42, %v702_v27  ;;  %v1908_v31 = vpop.f32.mrb[10].mxu0 }
 0x192   : > { %v2986_v32 = vpop.eup %2148  ;;  %2156 = vpow2.f32 %v869_v25  ;;  %v833_v34 = vand.u32 2147483647, %v2981_v26  ;;  %v705_v29 = vpop.f32.mrb[11].mxu0  ;;  %v2992_v39 = vadd.f32 %v1908_v31, %v2946_v42  ;;  %v817_v20 = vmax.f32 %v2981_v26, 0.0 }
 0x193   : > { %v905_v35 = vadd.f32 1.0, %v2986_v32  ;;  %2158 = vpow2.f32 %v865_v28  ;;  %v831_v38 = vand.u32 2147483647, %v2984_v30  ;;  %v2997_v46 = vadd.f32 %v2946_v42, %v705_v29 }
 0x194   : > { %v849_v37 = vsub.f32 0.0, %v833_v34  ;;  %v2994_v40 = vpop.eup %2150  ;;  %v834_v49 = vand.u32 2147483647, %v2992_v39  ;;  %v908_v62 = vmul.f32 -0.5, %v2986_v32  ;;  %v911_v15 = vand.u32 2147483647, %v2986_v32 }
 0x195   : > { %v847_v44 = vsub.f32 0.0, %v831_v38  ;;  %2160 = vlog2.f32 %v905_v35  ;;  %v914_v51 = vadd.f32 1.0, %v2994_v40  ;;  %v832_v55 = vand.u32 2147483647, %v2997_v46 }
 0x196   : > { %v875_v43 = vmul.f32 1.442695, %v849_v37  ;;  %v850_v0 = vsub.f32 0.0, %v834_v49  ;;  %v917_v16 = vmul.f32 -0.5, %v2994_v40  ;;  %v909_v22 = vadd.f32 1.0, %v908_v62 }
 0x197   : > { %v1911_v47 = vpop.f32.mrb[12].mxu0  ;;  %v871_v48 = vmul.f32 1.442695, %v847_v44  ;;  %v848_v14 = vsub.f32 0.0, %v832_v55  ;;  %v920_v23 = vand.u32 2147483647, %v2994_v40 }
 0x198   : > { %2162 = vpow2.f32 %v875_v43  ;;  %v718_v50 = vpop.f32.mrb[13].mxu0  ;;  %v877_v18 = vmul.f32 1.442695, %v850_v0  ;;  %v815_v24 = vmax.f32 %v2984_v30, 0.0  ;;  %v818_v28 = vmax.f32 %v2992_v39, 0.0 }
 0x199   : > { %v1912_v52 = vpop.f32.mrb[14].mxu0  ;;  %2164 = vpow2.f32 %v855_v41  ;;  %v873_v31 = vmul.f32 1.442695, %v848_v14  ;;  %vm3033_vm0 = vcmp.lt.f32.partialorder %v911_v15, 0.0004427343  ;;  %v918_v34 = vadd.f32 1.0, %v917_v16 }
 0x19a   : > { %v3001_v53 = vpop.eup %2152  ;;  %v3004_v57 = vpop.f32.mrb[15].mxu0  ;;  %2166 = vpow2.f32 %v871_v48  ;;  %v3038_v29 = vadd.f32 %v1911_v47, %v2946_v42  ;;  %v910_v36 = vmul.f32 %v2986_v32, %v909_v22  ;;  %vm3046_vm1 = vcmp.lt.f32.partialorder %v920_v23, 0.0004427343 }
 0x19b   : > { %v3006_v58 = vpop.eup %2154  ;;  %2168 = vpow2.f32 %v857_v45  ;;  %v941_v63 = vadd.f32 1.0, %v3001_v53  ;;  %v944_v1 = vmul.f32 -0.5, %v3001_v53  ;;  %v3052_v47 = vadd.f32 %v2946_v42, %v718_v50 }
 0x19c   : > { %v3009_v61 = vpop.eup %2156  ;;  %2170 = vlog2.f32 %v914_v51  ;;  %v923_v17 = vadd.f32 1.0, %v3006_v58  ;;  %v926_v27 = vmul.f32 -0.5, %v3006_v58  ;;  %v3055_v48 = vadd.f32 %v1912_v52, %v2946_v42 }
 0x19d   : > { %v3013_v2 = vpop.eup %2158  ;;  %v950_v9 = vadd.f32 1.0, %v3009_v61  ;;  %2172 = vlog2.f32 %v941_v63  ;;  %v945_v37 = vadd.f32 1.0, %v944_v1  ;;  %v953_v38 = vmul.f32 -0.5, %v3009_v61 }
 0x19e   : > { %v932_v19 = vadd.f32 1.0, %v3013_v2  ;;  %v947_v49 = vand.u32 2147483647, %v3001_v53  ;;  %v927_v51 = vadd.f32 1.0, %v926_v27  ;;  %v935_v55 = vmul.f32 -0.5, %v3013_v2 }
 0x19f   : > { %v2161_v21 = vpop.eup %2160  ;;  %v919_v63 = vmul.f32 %v2994_v40, %v918_v34  ;;  %v929_v0 = vand.u32 2147483647, %v3006_v58  ;;  %v837_v50 = vand.u32 2147483647, %v3038_v29  ;;  %v3066_v52 = vmul.f32 %v3001_v53, %v945_v37 }
 0x1a0   : > { %2174 = vlog2.f32 %v932_v19  ;;  %v907_v43 = vmul.f32 0.6931472, %v2161_v21  ;;  %v954_v14 = vadd.f32 1.0, %v953_v38  ;;  %v938_v15 = vand.u32 2147483647, %v3013_v2 }
 0x1a1   : > { %2176 = vlog2.f32 %v950_v9  ;;  %v956_v9 = vand.u32 2147483647, %v3009_v61  ;;  %v853_v19 = vsub.f32 0.0, %v837_v50  ;;  %v835_v40 = vand.u32 2147483647, %v3052_v47 }
 0x1a2   : > { %v3029_v25 = vpop.eup %2162  ;;  %2178 = vlog2.f32 %v923_v17  ;;  %v913_v17 = vsel %vm3033_vm0, %v910_v36, %v907_v43  ;;  %v936_v21 = vadd.f32 1.0, %v935_v55  ;;  %v838_v53 = vand.u32 2147483647, %v3055_v48 }
 0x1a3   : > { %v3040_v35 = vpop.eup %2164  ;;  %2180 = vpow2.f32 %v877_v18  ;;  %v977_v45 = vadd.f32 1.0, %v3029_v25  ;;  %v3074_v18 = vmul.f32 %v3006_v58, %v927_v51  ;;  %vm3077_vm2 = vcmp.lt.f32.partialorder %v947_v49, 0.0004427343 }
 0x1a4   : > { %v3044_v41 = vpop.eup %2166  ;;  %2182 = vpow2.f32 %v873_v31  ;;  %vm3081_vm3 = vcmp.lt.f32.partialorder %v929_v0, 0.0004427343  ;;  %vm3085_vm4 = vcmp.lt.f32.partialorder %v956_v9, 0.0004427343  ;;  %v980_v34 = vmul.f32 -0.5, %v3029_v25 }
 0x1a5   : > { %v3057_v32 = vpop.eup %2168  ;;  %v959_v16 = vadd.f32 1.0, %v3044_v41  ;;  %2184 = vlog2.f32 %v977_v45  ;;  %v883_v58 = vmul.f32 1.442695, %v853_v19  ;;  %v851_v36 = vsub.f32 0.0, %v835_v40 }
 0x1a6   : > { %v2171_v62 = vpop.eup %2170  ;;  %v3092_v38 = vadd.f32 %v913_v17, %v809_v59  ;;  %v955_v43 = vmul.f32 %v3009_v61, %v954_v14  ;;  %v854_v45 = vsub.f32 0.0, %v838_v53  ;;  %vm3095_vm5 = vcmp.lt.f32.partialorder %v938_v15, 0.0004427343 }
 0x1a7   : > { %v2173_v22 = vpop.eup %2172  ;;  %v916_v1 = vmul.f32 0.6931472, %v2171_v62  ;;  %2186 = vlog2.f32 %v959_v16  ;;  %v879_v55 = vmul.f32 1.442695, %v851_v36  ;;  %v3101_v62 = vadd.f32 %v2946_v42, %v3004_v57 }
 0x1a8   : > { %2188 = vpow2.f32 %v883_v58  ;;  %v937_v61 = vmul.f32 %v3013_v2, %v936_v21  ;;  %v983_v9 = vand.u32 2147483647, %v3029_v25  ;;  %v943_v50 = vmul.f32 0.6931472, %v2173_v22 }
 0x1a9   : > { %v922_v56 = vsel %vm3046_vm1, %v919_v63, %v916_v1  ;;  %v981_v15 = vadd.f32 1.0, %v980_v34  ;;  %2190 = vpow2.f32 %v879_v55  ;;  %v885_v42 = vmul.f32 1.442695, %v854_v45 }
 0x1aa   : > { %v2175_v23 = vpop.eup %2174  ;;  %v836_v57 = vand.u32 2147483647, %v3101_v62  ;;  %v962_v44 = vmul.f32 -0.5, %v3044_v41  ;;  %v887_v2 = vadd.f32 1.0, %v3040_v35  ;;  %v3118_v40 = vadd.f32 %v922_v56, %v810_v3 }
 0x1ab   : > { %v2177_v37 = vpop.eup %2176  ;;  %v934_v59 = vmul.f32 0.6931472, %v2175_v23  ;;  %vm3122_vm6 = vcmp.lt.f32.partialorder %v983_v9, 0.0004427343  ;;  %v965_v21 = vand.u32 2147483647, %v3044_v41  ;;  %v982_v34 = vmul.f32 %v3029_v25, %v981_v15 }
 0x1ac   : > { %v2179_v49 = vpop.eup %2178  ;;  %v952_v14 = vmul.f32 0.6931472, %v2177_v37  ;;  %v852_v58 = vsub.f32 0.0, %v836_v57  ;;  %v949_v60 = vsel %vm3077_vm2, %v3066_v52, %v943_v50  ;;  %v963_v33 = vadd.f32 1.0, %v962_v44 }
 0x1ad   : > { %v3103_v0 = vpop.eup %2180  ;;  %v925_v19 = vmul.f32 0.6931472, %v2179_v49  ;;  %v940_v22 = vsel %vm3095_vm5, %v937_v61, %v934_v59  ;;  %v3151_v13 = vadd.f32 %v949_v60, %v813_v4  ;;  %v1048_v10 = vpack.c.bf16 %v3118_v40, %v3092_v38 }
 0x1ae   : > { %v986_v16 = vadd.f32 1.0, %v3103_v0  ;;  %v3110_v17 = vpop.eup %2182  ;;  %v958_v23 = vsel %vm3085_vm4, %v955_v43, %v952_v14  ;;  %v989_v36 = vmul.f32 -0.5, %v3103_v0  ;;  %v3139_v37 = vadd.f32 %v940_v22, %v812_v11 }
 0x1af   : > { %v968_v63 = vadd.f32 1.0, %v3110_v17  ;;  %v2185_v53 = vpop.eup %2184  ;;  %v931_v3 = vsel %vm3081_vm3, %v3074_v18, %v925_v19  ;;  %v881_v43 = vmul.f32 1.442695, %v852_v58  ;;  %v3143_v45 = vadd.f32 %v958_v23, %v814_v7 }
 0x1b0   : > { %2192 = vlog2.f32 %v986_v16  ;;  %v979_v52 = vmul.f32 0.6931472, %v2185_v53  ;;  %v971_v27 = vmul.f32 -0.5, %v3110_v17  ;;  %v896_v18 = vadd.f32 1.0, %v3057_v32 }
 0x1b1   : > { %2194 = vlog2.f32 %v968_v63  ;;  %v2187_v25 = vpop.eup %2186  ;;  %v3155_v11 = vadd.f32 %v931_v3, %v811_v5  ;;  %v990_v7 = vadd.f32 1.0, %v989_v36  ;;  %v992_v49 = vand.u32 2147483647, %v3103_v0 }
 0x1b2   : > { %2196 = vpow2.f32 %v885_v42  ;;  %v3147_v31 = vpop.eup %2188  ;;  %v890_v55 = vmul.f32 -0.5, %v3040_v35  ;;  %v961_v56 = vmul.f32 0.6931472, %v2187_v25  ;;  %v974_v54 = vand.u32 2147483647, %v3110_v17 }
 0x1b3   : > { %2198 = vlog2.f32 %v887_v2  ;;  %v1013_v51 = vadd.f32 1.0, %v3147_v31  ;;  %v1049_v6 = vpack.c.bf16 %v3139_v37, %v3155_v11  ;;  %v3165_v4 = vpop.eup %2190  ;;  %v985_v5 = vsel %vm3122_vm6, %v982_v34, %v979_v52  ;;  %v2112_v11 = vld [vmem:[#allocation10 + $0x20] sm:$0xff]  }
 0x1b4   : > { %2200 = vpow2.f32 %v881_v43  ;;  %v816_v59 = vmax.f32 %v2997_v46, 0.0  ;;  %v972_v61 = vadd.f32 1.0, %v971_v27  ;;  %v1050_v9 = vpack.c.bf16 %v3143_v45, %v3151_v13  ;;  %v2110_v45 = vld [vmem:[#allocation10 + $0x10] sm:$0xff]   ;;  %v2111_v13 = vld [vmem:[#allocation10 + $0x18] sm:$0xff]  }
 0x1b5   : > { %2202 = vlog2.f32 %v896_v18  ;;  %v964_v14 = vmul.f32 %v3044_v41, %v963_v33  ;;  %v995_v15 = vadd.f32 1.0, %v3165_v4  ;;  %v899_v16 = vmul.f32 -0.5, %v3057_v32 }
 0x1b6   : > { %2204 = vlog2.f32 %v1013_v51  ;;  %vm3175_vm7 = vcmp.lt.f32.partialorder %v965_v21, 0.0004427343  ;;  %v991_v57 = vmul.f32 %v3103_v0, %v990_v7  ;;  %vm993_vm8 = vcmp.lt.f32.partialorder %v992_v49, 0.0004427343 }
 0x1b7   : > { %v3182_v44 = vadd.f32 %v985_v5, %v817_v20  ;;  %v967_v41 = vsel %vm3175_vm7, %v964_v14, %v961_v56  ;;  %vm3186_vm9 = vcmp.lt.f32.partialorder %v974_v54, 0.0004427343  ;;  %v891_v2 = vadd.f32 1.0, %v890_v55 }
 0x1b8   : > { %v973_v53 = vmul.f32 %v3110_v17, %v972_v61  ;;  %2206 = vlog2.f32 %v995_v15  ;;  %v893_v23 = vand.u32 2147483647, %v3040_v35  ;;  %v900_v34 = vadd.f32 1.0, %v899_v16 }
 0x1b9   : > { %v3198_v58 = vadd.f32 %v967_v41, %v815_v24  ;;  %v902_v39 = vand.u32 2147483647, %v3057_v32  ;;  %v1016_v33 = vmul.f32 -0.5, %v3147_v31  ;;  %v892_v30 = vmul.f32 %v3040_v35, %v891_v2 }
 0x1ba   : > { %v2193_v50 = vpop.eup %2192  ;;  %vm3209_vm10 = vcmp.lt.f32.partialorder %v893_v23, 0.0004427343  ;;  %v901_v52 = vmul.f32 %v3057_v32, %v900_v34  ;;  %v807_v55 = vmax.f32 %v2963_v8, 0.0  ;;  %v808_v35 = vmax.f32 %v2970_v12, 0.0 }
 0x1bb   : > { %v988_v42 = vmul.f32 0.6931472, %v2193_v50  ;;  %v2195_v46 = vpop.eup %2194  ;;  %v998_v56 = vmul.f32 -0.5, %v3165_v4  ;;  %vm903_vm11 = vcmp.lt.f32.partialorder %v902_v39, 0.0004427343  ;;  %v1017_v54 = vadd.f32 1.0, %v1016_v33 }
 0x1bc   : > { %v2197_v22 = vpop.eup %2196  ;;  %v970_v21 = vmul.f32 0.6931472, %v2195_v46  ;;  %v1001_v12 = vand.u32 2147483647, %v3165_v4  ;;  %v822_v23 = vmax.f32 %v3055_v48, 0.0  ;;  %v819_v40 = vmax.f32 %v3052_v47, 0.0 }
 0x1bd   : > { %v994_v1 = vsel %vm993_vm8, %v991_v57, %v988_v42  ;;  %v2199_v0 = vpop.eup %2198  ;;  %v1022_v20 = vadd.f32 1.0, %v2197_v22  ;;  %v1025_v18 = vmul.f32 -0.5, %v2197_v22  ;;  %v999_v19 = vadd.f32 1.0, %v998_v56  ;;  %v2108_v47 = vld [vmem:[#allocation10] sm:$0xff]  }
 0x1be   : > { %v3193_v26 = vadd.f32 %v994_v1, %v818_v28  ;;  %v976_v60 = vsel %vm3186_vm9, %v973_v53, %v970_v21  ;;  %v889_v3 = vmul.f32 0.6931472, %v2199_v0  ;;  %v2201_v36 = vpop.eup %2200  ;;  %v1028_v42 = vand.u32 2147483647, %v2197_v22  ;;  %1945 = vmatprep.subr.bf16.mxu0 %v2108_v47  ;;  %1977 = vmatprep.subr.bf16.mxu1 %v2108_v47 }
 0x1bf   : > { %v3202_v17 = vadd.f32 %v976_v60, %v816_v59  ;;  %2208 = vlog2.f32 %v1022_v20  ;;  %v1004_v43 = vadd.f32 1.0, %v2201_v36  ;;  %v2203_v24 = vpop.eup %2202  ;;  %v1007_v5 = vmul.f32 -0.5, %v2201_v36  ;;  %1946 = vmatpush3.bf16.msra.mxu0 %v2108_v47 }
 0x1c0   : > { %v1052_v28 = vpack.c.bf16 %v3193_v26, %v3182_v44  ;;  %v895_v7 = vsel %vm3209_vm10, %v892_v30, %v889_v3  ;;  %v898_v49 = vmul.f32 0.6931472, %v2203_v24  ;;  %v2205_v51 = vpop.eup %2204  ;;  %v1019_v59 = vand.u32 2147483647, %v3147_v31  ;;  %v2115_v44 = vld [vmem:[#allocation10 + $0x38] sm:$0xff]  }
 0x1c1   : > { %v1051_v27 = vpack.c.bf16 %v3202_v17, %v3198_v58  ;;  %2210 = vlog2.f32 %v1004_v43  ;;  %v1031_v61 = vadd.f32 %v895_v7, %v807_v55  ;;  %v1015_v15 = vmul.f32 0.6931472, %v2205_v51  ;;  %v3250_v26 = vld [vmem:[%s3566_s4] ss:$0 sm:$0xff] }
 0x1c2   : > { %v904_v32 = vsel %vm903_vm11, %v901_v52, %v898_v49  ;;  %v2207_v14 = vpop.eup %2206  ;;  %v1026_v16 = vadd.f32 1.0, %v1025_v18  ;;  %v1018_v8 = vmul.f32 %v3147_v31, %v1017_v54  ;;  %v1008_v46 = vadd.f32 1.0, %v1007_v5 }
 0x1c3   : > { %v1032_v50 = vadd.f32 %v904_v32, %v808_v35  ;;  %vm3224_vm12 = vcmp.lt.f32.partialorder %v1019_v59, 0.0004427343  ;;  %v997_v2 = vmul.f32 0.6931472, %v2207_v14  ;;  %v1010_v0 = vand.u32 2147483647, %v2201_v36 }
 0x1c4   : > { %v1021_v1 = vsel %vm3224_vm12, %v1018_v8, %v1015_v15  ;;  %v1027_v53 = vmul.f32 %v2197_v22, %v1026_v16  ;;  %v821_v31 = vmax.f32 %v3038_v29, 0.0  ;;  %v1000_v20 = vmul.f32 %v3165_v4, %v999_v19 }
 0x1c5   : > { %v1047_v57 = vpack.c.bf16 %v1032_v50, %v1031_v61  ;;  %vm1029_vm13 = vcmp.lt.f32.partialorder %v1028_v42, 0.0004427343  ;;  %vm1002_vm14 = vcmp.lt.f32.partialorder %v1001_v12, 0.0004427343  ;;  %v1009_v22 = vmul.f32 %v2201_v36, %v1008_v46 }
 0x1c6   : > { %v1045_v60 = vadd.f32 %v1021_v1, %v821_v31  ;;  %v1003_v3 = vsel %vm1002_vm14, %v1000_v20, %v997_v2  ;;  %v820_v29 = vmax.f32 %v3101_v62, 0.0  ;;  %vm1011_vm15 = vcmp.lt.f32.partialorder %v1010_v0, 0.0004427343  ;;  %v2109_v62 = vld [vmem:[#allocation10 + $0x8] sm:$0xff]  }
 0x1c7   : > { %1929 = vmatprep.mubr.bf16.mxu1 %v1047_v57  ;;  %v1043_v4 = vadd.f32 %v1003_v3, %v819_v40  ;;  %1947 = vmatprep.subr.bf16.mxu0 %v2109_v62 }
 0x1c8   : > { %1930 = vmatmul.mubr.bf16.vlgmr.msra.gmra.mrb[0].mxu1 %v1048_v10  ;;  %1948 = vmatpush3.bf16.msra.mxu0 %v2109_v62 }
 0x1c9   : > { %v2209_v41 = vpop.eup %2208  ;;  %1933 = vmatprep.mubr.bf16.mxu1 %v1049_v6  ;;  %1985 = vmatpush3.bf16.msra.mxu1 %v2108_v47  ;;  %v2113_v6 = vld [vmem:[#allocation10 + $0x28] sm:$0xff]  }
 0x1ca   : > { %v1024_v21 = vmul.f32 0.6931472, %v2209_v41  ;;  %1978 = vmatprep.subr.bf16.mxu1 %v2109_v62  ;;  %1949 = vmatprep.subr.bf16.mxu0 %v2110_v45 }
 0x1cb   : > { %v2211_v34 = vpop.eup %2210 }
 0x1cc   : > { %v1030_v58 = vsel %vm1029_vm13, %v1027_v53, %v1024_v21  ;;  %v1006_v38 = vmul.f32 0.6931472, %v2211_v34  ;;  %1950 = vmatpush3.bf16.msra.mxu0 %v2110_v45 }
 0x1cd   : > { %v1046_v17 = vadd.f32 %v1030_v58, %v822_v23  ;;  %1986 = vmatpush3.bf16.msra.mxu1 %v2109_v62  ;;  %1951 = vmatprep.subr.bf16.mxu0 %v2111_v13 }
 0x1ce   : > { %v1012_v10 = vsel %vm1011_vm15, %v1009_v22, %v1006_v38  ;;  %1979 = vmatprep.subr.bf16.mxu1 %v2110_v45 }
 0x1cf   : > { %v1054_v48 = vpack.c.bf16 %v1046_v17, %v1045_v60  ;;  %v1044_v39 = vadd.f32 %v1012_v10, %v820_v29 }
 0x1d0   : > { %1934 = vmatmul.mubr.bf16.gmra.mrb[4].mxu1 %v1050_v9  ;;  %1952 = vmatpush3.bf16.msra.mxu0 %v2111_v13  ;;  %v2114_v9 = vld [vmem:[#allocation10 + $0x30] sm:$0xff]  }
 0x1d1   : > { %v1053_v37 = vpack.c.bf16 %v1044_v39, %v1043_v4  ;;  %1937 = vmatprep.mubr.bf16.mxu1 %v1051_v27  ;;  %1987 = vmatpush3.bf16.msra.mxu1 %v2110_v45 }
 0x1d2   : > { %1980 = vmatprep.subr.bf16.mxu1 %v2111_v13  ;;  %1953 = vmatprep.subr.bf16.mxu0 %v2112_v11 }
 0x1d4   : > { %1954 = vmatpush3.bf16.msra.mxu0 %v2112_v11 }
 0x1d5   : > { %1988 = vmatpush3.bf16.msra.mxu1 %v2111_v13  ;;  %1955 = vmatprep.subr.bf16.mxu0 %v2113_v6 }
 0x1d6   : > { %1981 = vmatprep.subr.bf16.mxu1 %v2112_v11 }
 0x1d8   : > { %1938 = vmatmul.mubr.bf16.gmra.mrb[8].mxu1 %v1052_v28  ;;  %1956 = vmatpush3.bf16.msra.mxu0 %v2113_v6 }
 0x1d9   : > { %1941 = vmatprep.mubr.bf16.mxu1 %v1053_v37  ;;  %1989 = vmatpush3.bf16.msra.mxu1 %v2112_v11 }
 0x1da   : > { %1982 = vmatprep.subr.bf16.mxu1 %v2113_v6  ;;  %1957 = vmatprep.subr.bf16.mxu0 %v2114_v9 }
 0x1dc   : > { %1958 = vmatpush3.bf16.msra.mxu0 %v2114_v9 }
 0x1dd   : > { %1990 = vmatpush3.bf16.msra.mxu1 %v2113_v6  ;;  %1959 = vmatprep.subr.bf16.mxu0 %v2115_v44 }
 0x1de   : > { %1983 = vmatprep.subr.bf16.mxu1 %v2114_v9 }
 0x1e0   : > { %1942 = vmatmul.mubr.bf16.gmra.mrb[12].mxu1 %v1054_v48  ;;  %1960 = vmatpush3.bf16.msra.mxu0 %v2115_v44 }
 0x1e1   : > { %1991 = vmatpush3.bf16.msra.mxu1 %v2114_v9 }
 0x1e2   : > { %1984 = vmatprep.subr.bf16.mxu1 %v2115_v44 }
 0x1e5   : > { %1992 = vmatpush3.bf16.msra.mxu1 %v2115_v44 }
 0x29b   : > { %v1931_v36 = vpop.f32.mrb[0].mxu1 }
 0x29c   : > { %v3253_v28 = vadd.f32 %v1931_v36, %v3250_v26  ;;  %v1160_v33 = vpop.f32.mrb[1].mxu1 }
 0x29d   : > { %v3256_v43 = vadd.f32 %v3250_v26, %v1160_v33  ;;  %v1932_v30 = vpop.f32.mrb[2].mxu1 }
 0x29e   : > { %v1241_v24 = vand.u32 2147483647, %v3253_v28  ;;  %v3260_v25 = vadd.f32 %v1932_v30, %v3250_v26  ;;  %v1163_v52 = vpop.f32.mrb[3].mxu1  ;;  %v1225_v4 = vmax.f32 %v3253_v28, 0.0 }
 0x29f   : > { %v1239_v27 = vand.u32 2147483647, %v3256_v43  ;;  %v3264_v18 = vadd.f32 %v3250_v26, %v1163_v52  ;;  %v1223_v62 = vmax.f32 %v3256_v43, 0.0 }
 0x2a0   : > { %v1257_v7 = vsub.f32 0.0, %v1241_v24  ;;  %v1242_v49 = vand.u32 2147483647, %v3260_v25  ;;  %v1226_v45 = vmax.f32 %v3260_v25, 0.0 }
 0x2a1   : > { %v1255_v51 = vsub.f32 0.0, %v1239_v27  ;;  %v1240_v55 = vand.u32 2147483647, %v3264_v18  ;;  %v1224_v11 = vmax.f32 %v3264_v18, 0.0 }
 0x2a2   : > { %v1275_v35 = vmul.f32 1.442695, %v1257_v7  ;;  %v1258_v56 = vsub.f32 0.0, %v1242_v49 }
 0x2a3   : > { %v1271_v54 = vmul.f32 1.442695, %v1255_v51  ;;  %v1256_v5 = vsub.f32 0.0, %v1240_v55  ;;  %v1935_v32 = vpop.f32.mrb[4].mxu1 }
 0x2a4   : > { %2212 = vpow2.f32 %v1275_v35  ;;  %v1277_v59 = vmul.f32 1.442695, %v1258_v56  ;;  %v3269_v61 = vadd.f32 %v1935_v32, %v3250_v26  ;;  %v1176_v50 = vpop.f32.mrb[5].mxu1 }
 0x2a5   : > { %2214 = vpow2.f32 %v1271_v54  ;;  %v1273_v14 = vmul.f32 1.442695, %v1256_v5  ;;  %v3272_v15 = vadd.f32 %v3250_v26, %v1176_v50  ;;  %v1936_v16 = vpop.f32.mrb[6].mxu1 }
 0x2a6   : > { %2216 = vpow2.f32 %v1277_v59  ;;  %v1245_v19 = vand.u32 2147483647, %v3269_v61  ;;  %v3276_v42 = vadd.f32 %v1936_v16, %v3250_v26  ;;  %v1179_v57 = vpop.f32.mrb[7].mxu1  ;;  %v1229_v33 = vmax.f32 %v3269_v61, 0.0 }
 0x2a7   : > { %2218 = vpow2.f32 %v1273_v14  ;;  %v1243_v8 = vand.u32 2147483647, %v3272_v15  ;;  %v3280_v12 = vadd.f32 %v3250_v26, %v1179_v57  ;;  %v1227_v30 = vmax.f32 %v3272_v15, 0.0 }
 0x2a8   : > { %v1261_v46 = vsub.f32 0.0, %v1245_v19  ;;  %v1246_v41 = vand.u32 2147483647, %v3276_v42  ;;  %v1230_v52 = vmax.f32 %v3276_v42, 0.0 }
 0x2a9   : > { %v1259_v63 = vsub.f32 0.0, %v1243_v8  ;;  %v1244_v2 = vand.u32 2147483647, %v3280_v12  ;;  %v1228_v27 = vmax.f32 %v3280_v12, 0.0 }
 0x2aa   : > { %v1283_v1 = vmul.f32 1.442695, %v1261_v46  ;;  %v1262_v21 = vsub.f32 0.0, %v1246_v41 }
 0x2ab   : > { %v1279_v53 = vmul.f32 1.442695, %v1259_v63  ;;  %v1260_v0 = vsub.f32 0.0, %v1244_v2  ;;  %v1939_v31 = vpop.f32.mrb[8].mxu1 }
 0x2ac   : > { %2220 = vpow2.f32 %v1283_v1  ;;  %v1285_v20 = vmul.f32 1.442695, %v1262_v21  ;;  %v3285_v23 = vadd.f32 %v1939_v31, %v3250_v26  ;;  %v1192_v34 = vpop.f32.mrb[9].mxu1 }
 0x2ad   : > { %2222 = vpow2.f32 %v1279_v53  ;;  %v1281_v58 = vmul.f32 1.442695, %v1260_v0  ;;  %v1940_v22 = vpop.f32.mrb[10].mxu1  ;;  %v3311_v56 = vadd.f32 %v3250_v26, %v1192_v34 }
 0x2ae   : > { %v2213_v60 = vpop.eup %2212  ;;  %2224 = vpow2.f32 %v1285_v20  ;;  %v1249_v3 = vand.u32 2147483647, %v3285_v23  ;;  %v3288_v17 = vpop.f32.mrb[11].mxu1  ;;  %v3314_v54 = vadd.f32 %v1940_v22, %v3250_v26 }
 0x2af   : > { %v2215_v38 = vpop.eup %2214  ;;  %v1321_v40 = vadd.f32 1.0, %v2213_v60  ;;  %2226 = vpow2.f32 %v1281_v58  ;;  %v1324_v47 = vmul.f32 -0.5, %v2213_v60  ;;  %v1327_v13 = vand.u32 2147483647, %v2213_v60 }
 0x2b0   : > { %v2217_v29 = vpop.eup %2216  ;;  %v1303_v10 = vadd.f32 1.0, %v2215_v38  ;;  %v1265_v37 = vsub.f32 0.0, %v1249_v3  ;;  %v1306_v44 = vmul.f32 -0.5, %v2215_v38  ;;  %v1309_v50 = vand.u32 2147483647, %v2215_v38 }
 0x2b1   : > { %v3290_v48 = vpop.eup %2218  ;;  %2228 = vlog2.f32 %v1321_v40  ;;  %v1330_v39 = vadd.f32 1.0, %v2217_v29  ;;  %v1333_v36 = vmul.f32 -0.5, %v2217_v29  ;;  %v1325_v55 = vadd.f32 1.0, %v1324_v47 }
 0x2b2   : > { %2230 = vlog2.f32 %v1303_v10  ;;  %v1312_v6 = vadd.f32 1.0, %v3290_v48  ;;  %v1291_v7 = vmul.f32 1.442695, %v1265_v37  ;;  %v1315_v35 = vmul.f32 -0.5, %v3290_v48 }
 0x2b3   : > { %2232 = vlog2.f32 %v1330_v39  ;;  %v3297_v9 = vpop.f32.mrb[12].mxu1  ;;  %vm3318_vm0 = vcmp.lt.f32.partialorder %v1327_v13, 0.0004427343  ;;  %v1307_v19 = vadd.f32 1.0, %v1306_v44  ;;  %v1334_v57 = vadd.f32 1.0, %v1333_v36 }
 0x2b4   : > { %v3301_v24 = vpop.f32.mrb[13].mxu1  ;;  %2234 = vlog2.f32 %v1312_v6  ;;  %v1336_v8 = vand.u32 2147483647, %v2217_v29  ;;  %v1318_v63 = vand.u32 2147483647, %v3290_v48  ;;  %v1326_v21 = vmul.f32 %v2213_v60, %v1325_v55 }
 0x2b5   : > { %v3305_v49 = vpop.f32.mrb[14].mxu1  ;;  %2236 = vpow2.f32 %v1291_v7  ;;  %v1316_v53 = vadd.f32 1.0, %v1315_v35  ;;  %vm3330_vm1 = vcmp.lt.f32.partialorder %v1309_v50, 0.0004427343  ;;  %v1247_v22 = vand.u32 2147483647, %v3311_v56 }
 0x2b6   : > { %v3307_v51 = vpop.eup %2220  ;;  %v3316_v5 = vpop.f32.mrb[15].mxu1  ;;  %v1308_v10 = vmul.f32 %v2215_v38, %v1307_v19  ;;  %v1335_v39 = vmul.f32 %v2217_v29, %v1334_v57  ;;  %vm3336_vm2 = vcmp.lt.f32.partialorder %v1336_v8, 0.0004427343  ;;  %vm3340_vm3 = vcmp.lt.f32.partialorder %v1318_v63, 0.0004427343 }
 0x2b7   : > { %v2223_v32 = vpop.eup %2222  ;;  %v1357_v14 = vadd.f32 1.0, %v3307_v51  ;;  %v1360_v2 = vmul.f32 -0.5, %v3307_v51  ;;  %v1363_v6 = vand.u32 2147483647, %v3307_v51  ;;  %v1317_v55 = vmul.f32 %v3290_v48, %v1316_v53 }
 0x2b8   : > { %v3323_v16 = vpop.eup %2224  ;;  %v1339_v46 = vadd.f32 1.0, %v2223_v32  ;;  %v1342_v0 = vmul.f32 -0.5, %v2223_v32  ;;  %v1345_v34 = vand.u32 2147483647, %v2223_v32  ;;  %v3394_v47 = vadd.f32 %v3250_v26, %v3301_v24 }
 0x2b9   : > { %v3325_v41 = vpop.eup %2226  ;;  %2238 = vlog2.f32 %v1357_v14  ;;  %v1366_v1 = vadd.f32 1.0, %v3323_v16  ;;  %v1361_v13 = vadd.f32 1.0, %v1360_v2  ;;  %v1369_v38 = vmul.f32 -0.5, %v3323_v16 }
 0x2ba   : > { %2240 = vlog2.f32 %v1339_v46  ;;  %v1348_v58 = vadd.f32 1.0, %v3325_v41  ;;  %v1343_v7 = vadd.f32 1.0, %v1342_v0  ;;  %vm3349_vm4 = vcmp.lt.f32.partialorder %v1345_v34, 0.0004427343 }
 0x2bb   : > { %v2229_v31 = vpop.eup %2228  ;;  %2242 = vlog2.f32 %v1366_v1  ;;  %v1372_v50 = vand.u32 2147483647, %v3323_v16  ;;  %v1263_v14 = vsub.f32 0.0, %v1247_v22  ;;  %v1351_v8 = vmul.f32 -0.5, %v3325_v41 }
 0x2bc   : > { %v2231_v3 = vpop.eup %2230  ;;  %v1323_v40 = vmul.f32 0.6931472, %v2229_v31  ;;  %2244 = vlog2.f32 %v1348_v58  ;;  %v1250_v1 = vand.u32 2147483647, %v3314_v54  ;;  %v1344_v53 = vmul.f32 %v2223_v32, %v1343_v7 }
 0x2bd   : > { %v2233_v37 = vpop.eup %2232  ;;  %v1305_v19 = vmul.f32 0.6931472, %v2231_v3  ;;  %v1287_v2 = vmul.f32 1.442695, %v1263_v14  ;;  %v1370_v0 = vadd.f32 1.0, %v1369_v38  ;;  %v1352_v32 = vadd.f32 1.0, %v1351_v8 }
 0x2be   : > { %v1329_v44 = vsel %vm3318_vm0, %v1326_v21, %v1323_v40  ;;  %v1332_v36 = vmul.f32 0.6931472, %v2233_v37  ;;  %v2235_v29 = vpop.eup %2234  ;;  %v1362_v21 = vmul.f32 %v3307_v51, %v1361_v13  ;;  %v1354_v31 = vand.u32 2147483647, %v3325_v41 }
 0x2bf   : > { %v1314_v59 = vmul.f32 0.6931472, %v2235_v29  ;;  %v3357_v46 = vpop.eup %2236  ;;  %v1449_v63 = vadd.f32 %v1329_v44, %v1225_v4  ;;  %vm3366_vm5 = vcmp.lt.f32.partialorder %v1363_v6, 0.0004427343  ;;  %vm3370_vm6 = vcmp.lt.f32.partialorder %v1372_v50, 0.0004427343 }
 0x2c0   : > { %v1338_v57 = vsel %vm3336_vm2, %v1335_v39, %v1332_v36  ;;  %2246 = vpow2.f32 %v1287_v2  ;;  %v1266_v25 = vsub.f32 0.0, %v1250_v1  ;;  %v1393_v3 = vadd.f32 1.0, %v3357_v46 }
 0x2c1   : > { %v1450_v48 = vadd.f32 %v1338_v57, %v1226_v45  ;;  %v1311_v45 = vsel %vm3330_vm1, %v1308_v10, %v1305_v19  ;;  %v1320_v51 = vsel %vm3340_vm3, %v1317_v55, %v1314_v59  ;;  %v3381_v37 = vadd.f32 %v3250_v26, %v3288_v17 }
 0x2c2   : > { %v1293_v60 = vmul.f32 1.442695, %v1266_v25  ;;  %v3385_v13 = vadd.f32 %v3297_v9, %v3250_v26  ;;  %v1371_v20 = vmul.f32 %v3323_v16, %v1370_v0  ;;  %vm3388_vm7 = vcmp.lt.f32.partialorder %v1354_v31, 0.0004427343 }
 0x2c3   : > { %v2239_v34 = vpop.eup %2238  ;;  %v1464_v58 = vpack.c.bf16 %v1450_v48, %v1449_v63  ;;  %v1447_v17 = vadd.f32 %v1311_v45, %v1223_v62  ;;  %v1448_v36 = vadd.f32 %v1320_v51, %v1224_v11  ;;  %v1353_v38 = vmul.f32 %v3325_v41, %v1352_v32 }
 0x2c4   : > { %v2241_v4 = vpop.eup %2240  ;;  %2248 = vpow2.f32 %v1293_v60  ;;  %v1359_v16 = vmul.f32 0.6931472, %v2239_v34  ;;  %v1248_v29 = vand.u32 2147483647, %v3381_v37  ;;  %v1253_v18 = vand.u32 2147483647, %v3385_v13 }
 0x2c5   : > { %v2243_v40 = vpop.eup %2242  ;;  %v1341_v39 = vmul.f32 0.6931472, %v2241_v4  ;;  %2250 = vlog2.f32 %v1393_v3  ;;  %v1251_v55 = vand.u32 2147483647, %v3394_v47  ;;  %v3414_v41 = vadd.f32 %v3305_v49, %v3250_v26 }
 0x2c6   : > { %v1368_v6 = vmul.f32 0.6931472, %v2243_v40  ;;  %v2245_v44 = vpop.eup %2244  ;;  %v1264_v11 = vsub.f32 0.0, %v1248_v29  ;;  %v3420_v35 = vadd.f32 %v3250_v26, %v3316_v5  ;;  %v1463_v50 = vpack.c.bf16 %v1448_v36, %v1447_v17 }
 0x2c7   : > { %v1347_v9 = vsel %vm3349_vm4, %v1344_v53, %v1341_v39  ;;  %v1350_v7 = vmul.f32 0.6931472, %v2245_v44  ;;  %v1365_v14 = vsel %vm3366_vm5, %v1362_v21, %v1359_v16  ;;  %v1267_v57 = vsub.f32 0.0, %v1251_v55 }
 0x2c8   : > { %v1451_v24 = vadd.f32 %v1347_v9, %v1227_v30  ;;  %v1374_v43 = vsel %vm3370_vm6, %v1371_v20, %v1368_v6  ;;  %v1269_v30 = vsub.f32 0.0, %v1253_v18  ;;  %v1289_v19 = vmul.f32 1.442695, %v1264_v11  ;;  %1961 = vmatprep.mubr.bf16.mxu0 %v1463_v50 }
 0x2c9   : > { %v1356_v62 = vsel %vm3388_vm7, %v1353_v38, %v1350_v7  ;;  %v1254_v59 = vand.u32 2147483647, %v3414_v41  ;;  %v1454_v49 = vadd.f32 %v1374_v43, %v1230_v52  ;;  %1962 = vmatmul.mubr.bf16.vlgmr.msra.gmra.mrb[16].mxu0 %v1464_v58  ;;  %v1453_v5 = vadd.f32 %v1365_v14, %v1229_v33 }
 0x2ca   : > { %v1452_v15 = vadd.f32 %v1356_v62, %v1228_v27  ;;  %v3425_v8 = vpop.eup %2246  ;;  %v1299_v12 = vmul.f32 1.442695, %v1269_v30  ;;  %v1252_v27 = vand.u32 2147483647, %v3420_v35  ;;  %2252 = vpow2.f32 %v1289_v19 }
 0x2cb   : > { %v1375_v26 = vadd.f32 1.0, %v3425_v8  ;;  %v1295_v48 = vmul.f32 1.442695, %v1267_v57  ;;  %v1270_v2 = vsub.f32 0.0, %v1254_v59  ;;  %v1466_v52 = vpack.c.bf16 %v1454_v49, %v1453_v5 }
 0x2cc   : > { %v1465_v63 = vpack.c.bf16 %v1452_v15, %v1451_v24  ;;  %2254 = vpow2.f32 %v1299_v12  ;;  %v1268_v1 = vsub.f32 0.0, %v1252_v27  ;;  %v1396_v34 = vmul.f32 -0.5, %v3357_v46 }
 0x2cd   : > { %2256 = vpow2.f32 %v1295_v48  ;;  %v1301_v42 = vmul.f32 1.442695, %v1270_v2  ;;  %v1399_v28 = vand.u32 2147483647, %v3357_v46  ;;  %v1378_v32 = vmul.f32 -0.5, %v3425_v8 }
 0x2ce   : > { %1965 = vmatprep.mubr.bf16.mxu0 %v1465_v63  ;;  %v2249_v21 = vpop.eup %2248  ;;  %2258 = vlog2.f32 %v1375_v26  ;;  %v1297_v31 = vmul.f32 1.442695, %v1268_v1  ;;  %v1397_v58 = vadd.f32 1.0, %v1396_v34  ;;  %v1233_v10 = vmax.f32 %v3285_v23, 0.0 }
 0x2cf   : > { %v1402_v53 = vadd.f32 1.0, %v2249_v21  ;;  %v2251_v0 = vpop.eup %2250  ;;  %2260 = vpow2.f32 %v1301_v42  ;;  %v1405_v61 = vmul.f32 -0.5, %v2249_v21  ;;  %v1408_v60 = vand.u32 2147483647, %v2249_v21 }
 0x2d0   : > { %v1395_v4 = vmul.f32 0.6931472, %v2251_v0  ;;  %v1398_v39 = vmul.f32 %v3357_v46, %v1397_v58  ;;  %vm1400_vm8 = vcmp.lt.f32.partialorder %v1399_v28, 0.0004427343  ;;  %v1379_v7 = vadd.f32 1.0, %v1378_v32 }
 0x2d1   : > { %2262 = vlog2.f32 %v1402_v53  ;;  %1966 = vmatmul.mubr.bf16.gmra.mrb[20].mxu0 %v1466_v52  ;;  %v1406_v3 = vadd.f32 1.0, %v1405_v61  ;;  %v1234_v46 = vmax.f32 %v3314_v54, 0.0  ;;  %v1381_v24 = vand.u32 2147483647, %v3425_v8 }
 0x2d2   : > { %2264 = vpow2.f32 %v1297_v31  ;;  %v1401_v17 = vsel %vm1400_vm8, %v1398_v39, %v1395_v4  ;;  %vm1409_vm9 = vcmp.lt.f32.partialorder %v1408_v60, 0.0004427343  ;;  %v1380_v54 = vmul.f32 %v3425_v8, %v1379_v7 }
 0x2d3   : > { %v1407_v29 = vmul.f32 %v2249_v21, %v1406_v3  ;;  %v1457_v43 = vadd.f32 %v1401_v17, %v1233_v10  ;;  %vm3456_vm10 = vcmp.lt.f32.partialorder %v1381_v24, 0.0004427343  ;;  %v1231_v49 = vmax.f32 %v3311_v56, 0.0 }
 0x2d4   : > { %v2253_v33 = vpop.eup %2252  ;;  %v1232_v1 = vmax.f32 %v3381_v37, 0.0  ;;  %v1235_v60 = vmax.f32 %v3394_v47, 0.0 }
 0x2d5   : > { %v1384_v25 = vadd.f32 1.0, %v2253_v33  ;;  %v1387_v36 = vmul.f32 -0.5, %v2253_v33  ;;  %v1390_v50 = vand.u32 2147483647, %v2253_v33 }
 0x2d6   : > { %v3434_v22 = vpop.eup %2254 }
 0x2d7   : > { %v1429_v45 = vadd.f32 1.0, %v3434_v22  ;;  %v3438_v51 = vpop.eup %2256  ;;  %2266 = vlog2.f32 %v1384_v25  ;;  %v1432_v11 = vmul.f32 -0.5, %v3434_v22  ;;  %v1388_v15 = vadd.f32 1.0, %v1387_v36 }
 0x2d8   : > { %v2259_v40 = vpop.eup %2258  ;;  %v1411_v6 = vadd.f32 1.0, %v3438_v51  ;;  %v1414_v30 = vmul.f32 -0.5, %v3438_v51  ;;  %v1435_v48 = vand.u32 2147483647, %v3434_v22  ;;  %vm1391_vm11 = vcmp.lt.f32.partialorder %v1390_v50, 0.0004427343 }
 0x2d9   : > { %2268 = vlog2.f32 %v1429_v45  ;;  %v3443_v20 = vpop.eup %2260  ;;  %v1377_v18 = vmul.f32 0.6931472, %v2259_v40  ;;  %v1433_v27 = vadd.f32 1.0, %v1432_v11  ;;  %v1389_v8 = vmul.f32 %v2253_v33, %v1388_v15 }
 0x2da   : > { %2270 = vlog2.f32 %v1411_v6  ;;  %v1438_v9 = vadd.f32 1.0, %v3443_v20  ;;  %v1441_v14 = vmul.f32 -0.5, %v3443_v20  ;;  %v1415_v2 = vadd.f32 1.0, %v1414_v30 }
 0x2db   : > { %v2263_v44 = vpop.eup %2262  ;;  %v1383_v12 = vsel %vm3456_vm10, %v1380_v54, %v1377_v18  ;;  %v1417_v0 = vand.u32 2147483647, %v3438_v51  ;;  %v1444_v31 = vand.u32 2147483647, %v3443_v20  ;;  %v1434_v61 = vmul.f32 %v3434_v22, %v1433_v27 }
 0x2dc   : > { %v3447_v16 = vpop.eup %2264  ;;  %v1404_v38 = vmul.f32 0.6931472, %v2263_v44  ;;  %2272 = vlog2.f32 %v1438_v9  ;;  %v1442_v42 = vadd.f32 1.0, %v1441_v14  ;;  %v1455_v53 = vadd.f32 %v1383_v12, %v1231_v49 }
 0x2dd   : > { %v1420_v23 = vadd.f32 1.0, %v3447_v16  ;;  %v1423_v63 = vmul.f32 -0.5, %v3447_v16  ;;  %v1237_v25 = vmax.f32 %v3385_v13, 0.0  ;;  %vm3470_vm12 = vcmp.lt.f32.partialorder %v1435_v48, 0.0004427343 }
 0x2de   : > { %v1410_v62 = vsel %vm1409_vm9, %v1407_v29, %v1404_v38  ;;  %v1416_v4 = vmul.f32 %v3438_v51, %v1415_v2  ;;  %v1426_v45 = vand.u32 2147483647, %v3447_v16  ;;  %v1443_v40 = vmul.f32 %v3443_v20, %v1442_v42 }
 0x2df   : > { %v1458_v55 = vadd.f32 %v1410_v62, %v1234_v46  ;;  %2274 = vlog2.f32 %v1420_v23  ;;  %v1424_v33 = vadd.f32 1.0, %v1423_v63  ;;  %vm1418_vm13 = vcmp.lt.f32.partialorder %v1417_v0, 0.0004427343 }
 0x2e0   : > { %v1238_v13 = vmax.f32 %v3414_v41, 0.0  ;;  %vm1445_vm14 = vcmp.lt.f32.partialorder %v1444_v31, 0.0004427343  ;;  %v1236_v9 = vmax.f32 %v3420_v35, 0.0  ;;  %vm1427_vm15 = vcmp.lt.f32.partialorder %v1426_v45, 0.0004427343 }
 0x2e1   : > { %v1468_v57 = vpack.c.bf16 %v1458_v55, %v1457_v43  ;;  %v2267_v59 = vpop.eup %2266  ;;  %v1425_v51 = vmul.f32 %v3447_v16, %v1424_v33  ;;  %v1817_v41 = vld [vmem:[%s3568_s6] ss:$0 sm:$0xff] }
 0x2e2   : > { %v1386_v5 = vmul.f32 0.6931472, %v2267_v59 }
 0x2e3   : > { %v2269_v26 = vpop.eup %2268 }
 0x2e4   : > { %v1431_v21 = vmul.f32 0.6931472, %v2269_v26  ;;  %v2271_v52 = vpop.eup %2270  ;;  %v1392_v56 = vsel %vm1391_vm11, %v1389_v8, %v1386_v5 }
 0x2e5   : > { %v1456_v34 = vadd.f32 %v1392_v56, %v1232_v1  ;;  %v1413_v58 = vmul.f32 0.6931472, %v2271_v52 }
 0x2e6   : > { %v2273_v28 = vpop.eup %2272  ;;  %v1437_v32 = vsel %vm3470_vm12, %v1434_v61, %v1431_v21 }
 0x2e7   : > { %v1440_v3 = vmul.f32 0.6931472, %v2273_v28  ;;  %v1467_v22 = vpack.c.bf16 %v1456_v34, %v1455_v53  ;;  %v1419_v6 = vsel %vm1418_vm13, %v1416_v4, %v1413_v58  ;;  %v1461_v17 = vadd.f32 %v1437_v32, %v1237_v25 }
 0x2e8   : > { %v1459_v7 = vadd.f32 %v1419_v6, %v1235_v60 }
 0x2e9   : > { %v2275_v39 = vpop.eup %2274  ;;  %v1446_v10 = vsel %vm1445_vm14, %v1443_v40, %v1440_v3  ;;  %1969 = vmatprep.mubr.bf16.mxu1 %v1467_v22 }
 0x2ea   : > { %v1422_v44 = vmul.f32 0.6931472, %v2275_v39  ;;  %v1462_v36 = vadd.f32 %v1446_v10, %v1238_v13  ;;  %1970 = vmatmul.mubr.bf16.vlgmr.msra.gmra.mrb[16].mxu1 %v1468_v57 }
 0x2ec   : > { %v1428_v20 = vsel %vm1427_vm15, %v1425_v51, %v1422_v44  ;;  %v1470_v46 = vpack.c.bf16 %v1462_v36, %v1461_v17 }
 0x2ed   : > { %v1460_v47 = vadd.f32 %v1428_v20, %v1236_v9 }
 0x2ef   : > { %v1469_v38 = vpack.c.bf16 %v1460_v47, %v1459_v7 }
 0x2f1   : > { %1973 = vmatprep.mubr.bf16.mxu1 %v1469_v38 }
 0x2f2   : > { %1974 = vmatmul.mubr.bf16.gmra.mrb[20].mxu1 %v1470_v46 }
 0x39c   : > { %v1963_v16 = vpop.f32.mrb[16].mxu0 }
 0x39d   : > { %v1585_v29 = vadd.f32 %v1963_v16, %v1817_v41  ;;  %v1576_v24 = vpop.f32.mrb[17].mxu0 }
 0x39e   : > { %v1577_v23 = vadd.f32 %v1817_v41, %v1576_v24  ;;  %v1964_v43 = vpop.f32.mrb[18].mxu0 }
 0x39f   : > { %1641 = vst [vmem:[%s3488_s15 + $0x10] sm:$0xff] %v1585_v29  ;;  %v1588_v35 = vadd.f32 %v1964_v43, %v1817_v41  ;;  %v1579_v18 = vpop.f32.mrb[19].mxu0 }
 0x3a0   : > { %1639 = vst [vmem:[%s3488_s15] sm:$0xff] %v1577_v23  ;;  %v1580_v62 = vadd.f32 %v1817_v41, %v1579_v18 }
 0x3a1   : > { %1642 = vst [vmem:[%s3488_s15 + $0x18] sm:$0xff] %v1588_v35 }
 0x3a2   : > { %1640 = vst [vmem:[%s3488_s15 + $0x8] sm:$0xff] %v1580_v62 }
 0x3a4   : > { %v1967_v11 = vpop.f32.mrb[20].mxu0 }
 0x3a5   : > { %v1601_v55 = vadd.f32 %v1967_v11, %v1817_v41  ;;  %v1592_v15 = vpop.f32.mrb[21].mxu0 }
 0x3a6   : > { %v1593_v30 = vadd.f32 %v1817_v41, %v1592_v15  ;;  %v1968_v54 = vpop.f32.mrb[22].mxu0 }
 0x3a7   : > { %1645 = vst [vmem:[%s3488_s15 + $0x30] sm:$0xff] %v1601_v55  ;;  %v1604_v50 = vadd.f32 %v1968_v54, %v1817_v41  ;;  %v1595_v14 = vpop.f32.mrb[23].mxu0 }
 0x3a8   : > { %1643 = vst [vmem:[%s3488_s15 + $0x20] sm:$0xff] %v1593_v30  ;;  %v1596_v19 = vadd.f32 %v1817_v41, %v1595_v14 }
 0x3a9   : > { %1646 = vst [vmem:[%s3488_s15 + $0x38] sm:$0xff] %v1604_v50 }
 0x3aa   : > { %1644 = vst [vmem:[%s3488_s15 + $0x28] sm:$0xff] %v1596_v19 }
 0x3bd   : > { %v1971_v57 = vpop.f32.mrb[16].mxu1 }
 0x3be   : > { %v1617_v59 = vadd.f32 %v1971_v57, %v1817_v41  ;;  %v1608_v49 = vpop.f32.mrb[17].mxu1 }
 0x3bf   : > { %v1609_v12 = vadd.f32 %v1817_v41, %v1608_v49  ;;  %v1972_v27 = vpop.f32.mrb[18].mxu1 }
 0x3c0   : > { %1649 = vst [vmem:[%s3488_s15 + $0x50] sm:$0xff] %v1617_v59  ;;  %v1620_v63 = vadd.f32 %v1972_v27, %v1817_v41  ;;  %v1611_v26 = vpop.f32.mrb[19].mxu1 }
 0x3c1   : > { %1647 = vst [vmem:[%s3488_s15 + $0x40] sm:$0xff] %v1609_v12  ;;  %v1612_v5 = vadd.f32 %v1817_v41, %v1611_v26 }
 0x3c2   : > { %1650 = vst [vmem:[%s3488_s15 + $0x58] sm:$0xff] %v1620_v63 }
 0x3c3   : > { %1648 = vst [vmem:[%s3488_s15 + $0x48] sm:$0xff] %v1612_v5 }
 0x3c5   : > { %v1975_v8 = vpop.f32.mrb[20].mxu1 }
 0x3c6   : > { %v1633_v48 = vadd.f32 %v1975_v8, %v1817_v41  ;;  %v1624_v2 = vpop.f32.mrb[21].mxu1 }
 0x3c7   : > { %v1625_v1 = vadd.f32 %v1817_v41, %v1624_v2  ;;  %v1976_v21 = vpop.f32.mrb[22].mxu1 }
 0x3c8   : > { %1653 = vst [vmem:[%s3488_s15 + $0x70] sm:$0xff] %v1633_v48  ;;  %v1636_v42 = vadd.f32 %v1976_v21, %v1817_v41  ;;  %v1627_v52 = vpop.f32.mrb[23].mxu1 }
 0x3c9   : > { %1651 = vst [vmem:[%s3488_s15 + $0x60] sm:$0xff] %v1625_v1  ;;  %v1628_v53 = vadd.f32 %v1817_v41, %v1627_v52 }
 0x3ca   : > { %1654 = vst [vmem:[%s3488_s15 + $0x78] sm:$0xff] %v1636_v42 }
 0x3cb   : > { %1652 = vst [vmem:[%s3488_s15 + $0x68] sm:$0xff] %v1628_v53 }
 0x3cc   : > { %2403 = shalt.err (!%p2400_p0)
}
 0x3cd   : > { %s2404_s10 = scalar_lea.hbm %s3508_s12, 2048  ;;  %s2408_s15 = scalar_lea.hbm %s3663_s7, 4096 }
 0x3ce   : > { %p2405_p4 = scmp.ne.s32.totalorder %s3508_s12, %s2404_s10  ;;  %p2409_p12 = scmp.lt.u32.totalorder %s3508_s12, %s3663_s7 }
 0x3cf   : > { %p2410_p1 = scmp.lt.u32.totalorder %s2408_s15, %s2404_s10  ;;  %p2412_p13 = scmp.lt.u32.totalorder %s2404_s10, %s3508_s12 }
 0x3d0   : > { %p2406_p2 = pnand %p2405_p4, %p2693_p10 }
 0x3d1   : > { %p2411_p11 = por %p2410_p1, %p2409_p12 }
 0x3d2   : > { %p2407_p8 = pneg %p2406_p2 }
 0x3d3   : > { %p2413_p6 = por %p2412_p13, %p2411_p11 }
 0x3d5   : > { %p2414_p3 = pnand %p2413_p6, %p2407_p8 }
 0x3d7   : > { %2417 = shalt.err (!%p2414_p3)
}
 0x3d8   : > { %s2491_s17 = smov 128   ;;  %s2492_s18 = smov 8  }
 0x3d9   : > { %2007 = dma.vmem_to_hbm [thread:$0]  (%p2693_p10), %s3510_s8, 2048, %s3508_s12, %s1656_s20, %s2491_s17, %s2491_s17, %s2492_s18  }
 0x3da PF: > { %s3664_s22 = sld [smem:[#allocation17_spill]]  ;;  %s3665_s9 = sld [smem:[#allocation19_spill]] }
 0x3db   : > { %p3667_p7 = scmp.ge.s32.totalorder %s2480_s29, 2 }
 0x3e0   : > { %s1684_s11 = sand.u32 1, %s3664_s22   ;;  %p3666_p5 = scmp.ne.s32.totalorder %s3665_s9, 0 }
 0x3e1   : > { %s1685_s13 = scalar_lea.sflag [#allocation6], %s1684_s11 }
 0x3e2   : > { %p2024_p9 = pnand %p3667_p7, %p3666_p5 }
 0x3e4   : > { %2455 = dma.done.wait (!%p2024_p9), %s1685_s13, 2048  }
 0x3e5   : > { %2457 = vsyncadd (!%p2024_p9), %s1685_s13, 4294965248  ;;  %s25_s29 = sadd.s32 1, %s2480_s29   ;;  %s3668_s24 = smov %s2464_s25 }
 0x3e6   : > { %p22_p0 = scmp.ge.s32.totalorder %s25_s29, 4   ;;  %s3669_s25 = smov %s2468_s26 }
 0x3e7   : > { %s3670_s26 = smov %s2705_s23  ;;  %s3671_s27 = smov %s2476_s28 }
 0x3e8   : > { %s3672_s28 = smov %s3674_s16  ;;  %24 = sbr.rel (!%p22_p0) target bundleno = 10 (0xa), region = 114 }
 0x3ef   :  { %1690 = vsyncpa [#allocation5], 1 }
 0x3f0   :  { %1692 = vsyncpa [#allocation5 + $0x1], 1 }
 0x3f1   :  { %1693 = vsyncpa [#allocation8], 1 }
 0x3f2   :  { %1694 = vsyncpa [#allocation11], 1 }
 0x3f3   :  { %1695 = vsyncpa [#allocation6], 1 }
 0x3f4   :  { %1697 = vsyncpa [#allocation6 + $0x1], 1 }

</bundles_post_ra>
